<compile_context>
chip_gen: v6e
topology: v6e:2x2x1
jax: 0.10.0
libtpu: 0.0.40
codegen_flags: <defaults>
</compile_context>

<pallas_src>
import functools

import jax
import jax.numpy as jnp
from jax.experimental import pallas as pl
from jax.experimental.pallas import tpu as pltpu

# ----- small, module-consistent sizes (stand in for 768 / 512,256,128 / etc.) -----
H = 128            # hidden size (stands in for 768)
NUM_LABELS = 8     # args.num_labels
MAX_SEQ = 10       # args.max_seq_length -> token_feature seq = 4*(MAX_SEQ-2) = 32
POOL_KS = (16, 8, 4)   # stands in for Pool k = (512, 256, 128)
BATCH = 16         # original batch; reshaped "document" batch is hardcoded to 4
VOCAB = 100


def _round_up(x, m):
    return ((x + m - 1) // m) * m


def _seq_tile(seq, max_tile=512):
    """Largest divisor of `seq` that is a multiple of 8 and <= max_tile, else seq."""
    if seq <= max_tile:
        return seq
    for t in range(max_tile - max_tile % 8, 7, -8):
        if seq % t == 0:
            return t
    # TODO(synk): pad seq on the host if it has no 8-multiple divisor.
    return seq


# --------------------------- Pallas kernel 1: Pool.proj + sigmoid ---------------------------

def _pool_score_kernel(x_ref, w_ref, b_ref, o_ref):
    # x: (tm, H) bf16 rows of h; w: (1, H) bf16; b: (1,) f32 scalar in SMEM.
    # o: (1, tm) f32 lane-dense scores = sigmoid(w . x_row + b).
    # dot_general contracts both operands on their last (hidden/lane) dim, so
    # no (tm, H) transpose is materialized through the XLU -- the MXU consumes
    # the operands as laid out and the kernel stays HBM-bandwidth-bound.
    s = jax.lax.dot_general(
        w_ref[...], x_ref[...],
        dimension_numbers=(((1,), (1,)), ((), ())),
        preferred_element_type=jnp.float32)                    # (1, tm) f32
    o_ref[...] = jax.nn.sigmoid(s + b_ref[0])


def pool_scores(h, w, b):
    """Pool.proj (Linear(H,1)) + sigmoid.  h: (B, N, H) -> scores (B, N).

    * lane-dense (1, M) output: one unmasked store per tile instead of M
      masked (., 1) stores and a 1-column MXU matmul.
    * rows padded to the tile size so production M (e.g. 2040) needs no
      divisibility assumption; padded scores are sliced off afterwards.
    * inputs fed as bf16 (f32 accumulation in the MXU): the kernel is purely
      memory-bound (~0.5 flop/byte), so halving HBM bytes ~halves wall time.
      In a mixed-precision pipeline the producer should emit bf16 directly;
      here the convert fuses with the pad/reshape outside the kernel.
    * row tiles of 512 ("parallel" axis): DMA/compute overlap and a v7x
      megacore split at production sizes.  2 buf x 512 x 768 x 2B ~ 1.5 MiB,
      well inside scoped-VMEM defaults.  (On single-TC v5e/v6e, tm=1024 is
      worth a sweep.)
    """
    B, N, Hd = h.shape
    M = B * N
    tm = 512 if M > 512 else _round_up(M, 8)
    Mp = _round_up(M, tm)

    x = h.reshape(M, Hd).astype(jnp.bfloat16)
    if Mp != M:
        x = jnp.pad(x, ((0, Mp - M), (0, 0)))
    wb = w.astype(jnp.bfloat16)

    out = pl.pallas_call(
        _pool_score_kernel,
        out_shape=jax.ShapeDtypeStruct((1, Mp), jnp.float32),
        grid=(Mp // tm,),
        in_specs=[
            pl.BlockSpec((tm, Hd), lambda i: (i, 0)),
            pl.BlockSpec((1, Hd), lambda i: (0, 0)),
            pl.BlockSpec(memory_space=pltpu.MemorySpace.SMEM),   # scalar bias
        ],
        out_specs=pl.BlockSpec((1, tm), lambda i: (0, i)),
        compiler_params=pltpu.CompilerParams(
            dimension_semantics=("parallel",)),
    )(x, wb, b)
    return out[0, :M].reshape(B, N)


# --------------------------- Pallas kernel 2: fused head ---------------------------

def _fused_head_kernel(a18_ref, a12_ref, a16_ref, a14_ref, pooled_ref,
                       w1_ref, b1_ref, w_ref, bw_ref, wc_ref, bc_ref,
                       o_ref, u_sc):
    """5x max-over-seq + s2tSA + classifier.

    Grid axis = seq chunks of att18 (the only large tensor).  Each step folds
    one chunk into a running max held in slot 0 of the packed u scratch; the
    last step reduces the four small resident tensors, runs both s2tSA matmuls
    as single (5*slot)-row MXU matmuls, does the per-batch softmax over the 5
    components (== dim=-2 of the (B, 5, H) view) in accumulator form, and
    writes the classifier output.
    """
    B = o_ref.shape[0]
    slot = u_sc.shape[0] // 5            # 8-row, sublane-aligned component slots
    Hd = u_sc.shape[1]
    k = pl.program_id(0)

    @pl.when(k == 0)
    def _init():
        # Zero the whole packed buffer so the sublane-padding rows stay finite,
        # then set the att18 running-max rows to -inf.
        u_sc[...] = jnp.zeros_like(u_sc)
        u_sc[0:B, :] = jnp.full((B, Hd), -jnp.inf, jnp.float32)

    # Running max over att18 seq chunks (slot 0).
    u_sc[0:B, :] = jnp.maximum(u_sc[0:B, :], jnp.max(a18_ref[...], axis=1))

    @pl.when(k == pl.num_programs(0) - 1)
    def _tail():
        # Remaining four (small, VMEM-resident) components, 8-row aligned slots.
        u_sc[1 * slot:1 * slot + B, :] = jnp.max(a12_ref[...], axis=1)
        u_sc[2 * slot:2 * slot + B, :] = jnp.max(a16_ref[...], axis=1)
        u_sc[3 * slot:3 * slot + B, :] = jnp.max(a14_ref[...], axis=1)
        u_sc[4 * slot:4 * slot + B, :] = jnp.max(pooled_ref[...], axis=1)

        # s2tSA: both matmuls as single (5*slot, H) MXU matmuls; `a` stays in
        # registers (no VMEM scratch round trip).
        u = u_sc[...]                                                  # (5*slot, H)
        f = jnp.maximum(
            jnp.dot(u, w1_ref[...], preferred_element_type=jnp.float32)
            + b1_ref[...], 0.0)
        a = (jnp.dot(f, w_ref[...], preferred_element_type=jnp.float32)
             + bw_ref[...])                                            # (5*slot, H)

        # Per-(batch, hidden) softmax over the 5 components, accumulator form
        # (few live temporaries), operating on full 8-row aligned slots; the
        # padded rows are finite and never read by the output.
        def comp(v, j):
            return v[j * slot:(j + 1) * slot, :]                       # (slot, H)

        m = comp(a, 0)
        for j in range(1, 5):
            m = jnp.maximum(m, comp(a, j))
        denom = jnp.zeros((slot, Hd), jnp.float32)
        s = jnp.zeros((slot, Hd), jnp.float32)
        for j in range(5):
            e = jnp.exp(comp(a, j) - m)
            denom = denom + e
            s = s + e * comp(u, j)
        s = s / denom                                                  # (slot, H)

        logits = (jnp.dot(s, wc_ref[...], preferred_element_type=jnp.float32)
                  + bc_ref[...])                                       # (slot, C)
        o_ref[...] = logits[0:B, :]


def fused_head(att18, att12, att16, att14, pooled4, p):
    """One pallas_call for the whole u-build + s2tSA + classifier tail."""
    B, S18, Hd = att18.shape
    C = p["cls_w"].shape[1]
    slot = _round_up(B, 8)
    ts = _seq_tile(S18)

    def resident(shape):
        # Constant-index, full-block inputs: single-buffered (double-buffering
        # buys nothing for revisited blocks and would blow past v7x's 64 MiB
        # VMEM at production shapes).
        return pl.BlockSpec(shape, lambda k, _r=len(shape): (0,) * _r,
                            pipeline_mode=pl.Buffered(1))

    # TODO(synk): once per-core grids matter on v7x, add a leading "parallel"
    # axis (e.g. over att18 chunks split per core) so the second TC is not idle.
    return pl.pallas_call(
        _fused_head_kernel,
        out_shape=jax.ShapeDtypeStruct((B, C), jnp.float32),
        grid=(S18 // ts,),
        in_specs=[
            pl.BlockSpec((B, ts, Hd), lambda k: (0, k, 0)),    # att18, seq-tiled
            resident(att12.shape), resident(att16.shape), resident(att14.shape),
            resident(pooled4.shape),
            resident(p["s2t_w1"].shape), resident(p["s2t_b1"].shape),
            resident(p["s2t_w"].shape), resident(p["s2t_bw"].shape),
            resident(p["cls_w"].shape), resident(p["cls_b"].shape),
        ],
        out_specs=pl.BlockSpec((B, C), lambda k: (0, 0)),      # resident output
        scratch_shapes=[pltpu.VMEM((5 * slot, Hd), jnp.float32)],
        compiler_params=pltpu.CompilerParams(
            dimension_semantics=("arbitrary",),
            # ~26 MiB at production (768-hidden) shapes: above v5e's 16 MiB
            # scoped default, below 32 MiB (v6e/v7x defaults, v7x physical 64).
            vmem_limit_bytes=32 * 1024 * 1024),
    )(att18, att12, att16, att14, pooled4,
      p["s2t_w1"], p["s2t_b1"], p["s2t_w"], p["s2t_bw"],
      p["cls_w"], p["cls_b"])


# --------------------------- JAX glue (faithful to reference) ---------------------------

def top_k_graph(scores, g1, g2, h, k):
    """Mirror of the reference top_k_graph (batch hardcoded to 4 in reference)."""
    k = max(2, k)
    values, idx = jax.lax.top_k(scores, k)                          # (4, k)
    new_h = jnp.take_along_axis(h, idx[:, :, None], axis=1)         # (4, k, H)
    new_h = new_h * values[:, :, None]

    def sub(g, ix):
        return g[ix][:, ix]

    g_section = jax.vmap(sub)(g1, idx)                              # (4, k, k)
    g_sent_rows = jax.vmap(sub)(g2, idx)
    # Faithfully reproduce the reference's use of g_section[2], g_section[3]
    # inside the "sentence" output (apparent bug in the original code).
    g_sentence = jnp.concatenate([g_sent_rows[:2], g_section[2:4]], axis=0)
    return g_section, g_sentence, new_h


def pool_forward(p, g1, g2, h, k):
    # nn.Dropout(p=0.1) is identity at inference time.
    scores = pool_scores(h, p["w"], p["b"])      # Pallas: Linear(768,1) + sigmoid
    return top_k_graph(scores, g1, g2, h, k)


def bert_stub(params, input_ids):
    # TODO(synk): real BertModel is external; deterministic embedding stand-in.
    emb = params["emb"][input_ids]                                  # (B, L, H)
    all_tok = jnp.tanh(emb)
    pooled = jnp.tanh(all_tok[:, 0, :] @ params["w_pool"] + params["b_pool"])
    return all_tok, pooled


def classify_forward(params, input_ids):
    all_tok, pooled = bert_stub(params, input_ids)
    token_feature = all_tok[:, 1:-1, :]                              # (16, L-2, H)
    token_feature = token_feature.reshape(-1, 4 * (MAX_SEQ - 2), H)  # (4, 32, H)

    # TODO(synk): self.layers (`rea`) is an external module and `section_mask_full`
    # is undefined in the reference forward; stood in with identity.
    layers = lambda x: x

    att18 = layers(token_feature)
    n0 = att18.shape[1]
    g1 = jnp.ones((4, n0, n0), jnp.float32)
    g2 = jnp.ones((4, n0, n0), jnp.float32)
    # TODO(synk): reference calls self.pools[i](h) with one arg (would raise);
    # we pass chained (g1, g2) adjacency as Pool.forward actually expects.
    g1, g2, new_att = pool_forward(params["pool0"], g1, g2, att18, POOL_KS[0])
    att16 = layers(new_att)
    g1, g2, new_att = pool_forward(params["pool1"], g1, g2, att16, POOL_KS[1])
    att14 = layers(new_att)
    g1, g2, new_att = pool_forward(params["pool2"], g1, g2, att14, POOL_KS[2])
    att12 = layers(new_att)

    pooled4 = pooled.reshape(-1, 4, H)                               # (4, 4, H)
    # Fused Pallas head: 5x max-over-seq + s2tSA + classifier in one launch.
    logits = fused_head(att18, att12, att16, att14, pooled4, params)
    return logits                                                    # (4, NUM_LABELS)


# --------------------------- parameters ---------------------------

def init_params(key):
    ks = jax.random.split(key, 8)

    def xavier(k, shape):
        lim = (6.0 / (shape[0] + shape[1])) ** 0.5
        return jax.random.uniform(k, shape, jnp.float32, -lim, lim)

    return {
        "emb": jax.random.normal(ks[0], (VOCAB, H), jnp.float32) * 0.02,
        "w_pool": xavier(ks[1], (H, H)),
        "b_pool": jnp.zeros((H,), jnp.float32),
        # Pool.proj = nn.Linear(H, 1): weight (1, H), bias (1,)
        "pool0": {"w": xavier(ks[2], (1, H)), "b": jnp.zeros((1,), jnp.float32)},
        "pool1": {"w": xavier(ks[3], (1, H)), "b": jnp.zeros((1,), jnp.float32)},
        "pool2": {"w": xavier(ks[4], (1, H)), "b": jnp.zeros((1,), jnp.float32)},
        "s2t_w1": xavier(ks[5], (H, H)),
        "s2t_b1": jnp.zeros((1, H), jnp.float32),   # constant(bias, 0) per customizedLinear
        "s2t_w": xavier(ks[6], (H, H)),
        "s2t_bw": jnp.zeros((1, H), jnp.float32),
        "cls_w": xavier(ks[7], (H, NUM_LABELS)),
        "cls_b": jnp.zeros((1, NUM_LABELS), jnp.float32),
    }


if __name__ == "__main__":
    key = jax.random.PRNGKey(0)
    input_ids = jax.random.randint(key, (BATCH, MAX_SEQ), 0, VOCAB)
    params = init_params(jax.random.PRNGKey(42))

    fwd = jax.jit(functools.partial(classify_forward, params))
    logits = fwd(input_ids)
    jax.block_until_ready(logits)
    assert logits.shape == (4, NUM_LABELS), logits.shape
    assert bool(jnp.all(jnp.isfinite(logits)))
    print("KERNEL_OK")
</pallas_src>

<mosaic_0001>
module attributes {stable_mosaic.version = 11 : i64} {
  func.func @_pool_score_kernel(%arg0: i32, %arg1: memref<128x128xbf16, #tpu.memory_space<vmem>>, %arg2: memref<1x128xbf16, #tpu.memory_space<vmem>>, %arg3: memref<1xf32, #tpu.memory_space<smem>>, %arg4: memref<1x128xf32, #tpu.memory_space<vmem>>) attributes {dimension_semantics = [#tpu.dimension_semantics<parallel>], iteration_bounds = array<i64: 1>, scalar_prefetch = 0 : i64, scratch_operands = 0 : i64, tpu.core_type = #tpu.core_type<tc>, window_params = [{transform_indices = @transform_0, window_bounds = array<i64: 128, 128>}, {pipeline_mode = #tpu.pipeline_mode<synchronous>, transform_indices = @transform_1, window_bounds = array<i64: 1, 128>}, {transform_indices = @transform_2, window_bounds = array<i64: 1>}, {transform_indices = @transform_3, window_bounds = array<i64: 1, 128>}]} {
    %c0 = arith.constant 0 : index
    %c0_0 = arith.constant 0 : index
    %0 = vector.load %arg2[%c0, %c0_0] : memref<1x128xbf16, #tpu.memory_space<vmem>>, vector<1x128xbf16>
    %c0_1 = arith.constant 0 : index
    %c0_2 = arith.constant 0 : index
    %1 = vector.load %arg1[%c0_1, %c0_2] : memref<128x128xbf16, #tpu.memory_space<vmem>>, vector<128x128xbf16>
    %cst = arith.constant dense<0.000000e+00> : vector<1x128xf32>
    %2 = tpu.matmul %0, %1, %cst {dimension_numbers = #tpu.dot_dimension_numbers<[1], [1], [0], [0], [0, 0, 1, 0], [], []>} : vector<1x128xbf16>, vector<128x128xbf16>, vector<1x128xf32> -> vector<1x128xf32>
    %c0_3 = arith.constant 0 : index
    %3 = memref.load %arg3[%c0_3] : memref<1xf32, #tpu.memory_space<smem>>
    %4 = vector.broadcast %3 : f32 to vector<1x128xf32>
    %5 = arith.addf %2, %4 : vector<1x128xf32>
    %6 = arith.negf %5 : vector<1x128xf32>
    %7 = math.exp %6 : vector<1x128xf32>
    %cst_4 = arith.constant 1.000000e+00 : f32
    %8 = vector.broadcast %cst_4 : f32 to vector<1x128xf32>
    %9 = arith.addf %8, %7 : vector<1x128xf32>
    %10 = arith.divf %8, %9 : vector<1x128xf32>
    %c0_5 = arith.constant 0 : index
    %c0_6 = arith.constant 0 : index
    %11 = vector.load %arg4[%c0_5, %c0_6] : memref<1x128xf32, #tpu.memory_space<vmem>>, vector<1x128xf32>
    tpu.vector_store %arg4[%c0_5, %c0_6], %10 {strides = array<i32>} : memref<1x128xf32, #tpu.memory_space<vmem>>, vector<1x128xf32>,
    return
  }
  func.func @transform_0(%arg0: i32) -> (i32, i32) {
    %c0_i32 = arith.constant 0 : i32
    %c0_i32_0 = arith.constant 0 : i32
    return %arg0, %c0_i32 : i32, i32
  }
  func.func @transform_1(%arg0: i32) -> (i32, i32) {
    %c0_i32 = arith.constant 0 : i32
    %c0_i32_0 = arith.constant 0 : i32
    %c0_i32_1 = arith.constant 0 : i32
    return %c0_i32, %c0_i32_0 : i32, i32
  }
  func.func @transform_2(%arg0: i32) -> i32 {
    %c0_i32 = arith.constant 0 : i32
    %c0_i32_0 = arith.constant 0 : i32
    return %c0_i32 : i32
  }
  func.func @transform_3(%arg0: i32) -> (i32, i32) {
    %c0_i32 = arith.constant 0 : i32
    %c0_i32_0 = arith.constant 0 : i32
    return %c0_i32, %arg0 : i32, i32
  }
}

module attributes {stable_mosaic.version = 11 : i64} {
  func.func @_pool_score_kernel(%arg0: i32, %arg1: memref<64x128xbf16, #tpu.memory_space<vmem>>, %arg2: memref<1x128xbf16, #tpu.memory_space<vmem>>, %arg3: memref<1xf32, #tpu.memory_space<smem>>, %arg4: memref<1x64xf32, #tpu.memory_space<vmem>>) attributes {dimension_semantics = [#tpu.dimension_semantics<parallel>], iteration_bounds = array<i64: 1>, scalar_prefetch = 0 : i64, scratch_operands = 0 : i64, tpu.core_type = #tpu.core_type<tc>, window_params = [{transform_indices = @transform_0, window_bounds = array<i64: 64, 128>}, {pipeline_mode = #tpu.pipeline_mode<synchronous>, transform_indices = @transform_1, window_bounds = array<i64: 1, 128>}, {transform_indices = @transform_2, window_bounds = array<i64: 1>}, {transform_indices = @transform_3, window_bounds = array<i64: 1, 64>}]} {
    %c0 = arith.constant 0 : index
    %c0_0 = arith.constant 0 : index
    %0 = vector.load %arg2[%c0, %c0_0] : memref<1x128xbf16, #tpu.memory_space<vmem>>, vector<1x128xbf16>
    %c0_1 = arith.constant 0 : index
    %c0_2 = arith.constant 0 : index
    %1 = vector.load %arg1[%c0_1, %c0_2] : memref<64x128xbf16, #tpu.memory_space<vmem>>, vector<64x128xbf16>
    %cst = arith.constant dense<0.000000e+00> : vector<1x64xf32>
    %2 = tpu.matmul %0, %1, %cst {dimension_numbers = #tpu.dot_dimension_numbers<[1], [1], [0], [0], [0, 0, 1, 0], [], []>} : vector<1x128xbf16>, vector<64x128xbf16>, vector<1x64xf32> -> vector<1x64xf32>
    %c0_3 = arith.constant 0 : index
    %3 = memref.load %arg3[%c0_3] : memref<1xf32, #tpu.memory_space<smem>>
    %4 = vector.broadcast %3 : f32 to vector<1x64xf32>
    %5 = arith.addf %2, %4 : vector<1x64xf32>
    %6 = arith.negf %5 : vector<1x64xf32>
    %7 = math.exp %6 : vector<1x64xf32>
    %cst_4 = arith.constant 1.000000e+00 : f32
    %8 = vector.broadcast %cst_4 : f32 to vector<1x64xf32>
    %9 = arith.addf %8, %7 : vector<1x64xf32>
    %10 = arith.divf %8, %9 : vector<1x64xf32>
    %c0_5 = arith.constant 0 : index
    %c0_6 = arith.constant 0 : index
    %11 = vector.load %arg4[%c0_5, %c0_6] : memref<1x64xf32, #tpu.memory_space<vmem>>, vector<1x64xf32>
    tpu.vector_store %arg4[%c0_5, %c0_6], %10 {strides = array<i32>} : memref<1x64xf32, #tpu.memory_space<vmem>>, vector<1x64xf32>,
    return
  }
  func.func @transform_0(%arg0: i32) -> (i32, i32) {
    %c0_i32 = arith.constant 0 : i32
    %c0_i32_0 = arith.constant 0 : i32
    return %arg0, %c0_i32 : i32, i32
  }
  func.func @transform_1(%arg0: i32) -> (i32, i32) {
    %c0_i32 = arith.constant 0 : i32
    %c0_i32_0 = arith.constant 0 : i32
    %c0_i32_1 = arith.constant 0 : i32
    return %c0_i32, %c0_i32_0 : i32, i32
  }
  func.func @transform_2(%arg0: i32) -> i32 {
    %c0_i32 = arith.constant 0 : i32
    %c0_i32_0 = arith.constant 0 : i32
    return %c0_i32 : i32
  }
  func.func @transform_3(%arg0: i32) -> (i32, i32) {
    %c0_i32 = arith.constant 0 : i32
    %c0_i32_0 = arith.constant 0 : i32
    return %c0_i32, %arg0 : i32, i32
  }
}

module attributes {stable_mosaic.version = 11 : i64} {
  func.func @_pool_score_kernel(%arg0: i32, %arg1: memref<32x128xbf16, #tpu.memory_space<vmem>>, %arg2: memref<1x128xbf16, #tpu.memory_space<vmem>>, %arg3: memref<1xf32, #tpu.memory_space<smem>>, %arg4: memref<1x32xf32, #tpu.memory_space<vmem>>) attributes {dimension_semantics = [#tpu.dimension_semantics<parallel>], iteration_bounds = array<i64: 1>, scalar_prefetch = 0 : i64, scratch_operands = 0 : i64, tpu.core_type = #tpu.core_type<tc>, window_params = [{transform_indices = @transform_0, window_bounds = array<i64: 32, 128>}, {pipeline_mode = #tpu.pipeline_mode<synchronous>, transform_indices = @transform_1, window_bounds = array<i64: 1, 128>}, {transform_indices = @transform_2, window_bounds = array<i64: 1>}, {transform_indices = @transform_3, window_bounds = array<i64: 1, 32>}]} {
    %c0 = arith.constant 0 : index
    %c0_0 = arith.constant 0 : index
    %0 = vector.load %arg2[%c0, %c0_0] : memref<1x128xbf16, #tpu.memory_space<vmem>>, vector<1x128xbf16>
    %c0_1 = arith.constant 0 : index
    %c0_2 = arith.constant 0 : index
    %1 = vector.load %arg1[%c0_1, %c0_2] : memref<32x128xbf16, #tpu.memory_space<vmem>>, vector<32x128xbf16>
    %cst = arith.constant dense<0.000000e+00> : vector<1x32xf32>
    %2 = tpu.matmul %0, %1, %cst {dimension_numbers = #tpu.dot_dimension_numbers<[1], [1], [0], [0], [0, 0, 1, 0], [], []>} : vector<1x128xbf16>, vector<32x128xbf16>, vector<1x32xf32> -> vector<1x32xf32>
    %c0_3 = arith.constant 0 : index
    %3 = memref.load %arg3[%c0_3] : memref<1xf32, #tpu.memory_space<smem>>
    %4 = vector.broadcast %3 : f32 to vector<1x32xf32>
    %5 = arith.addf %2, %4 : vector<1x32xf32>
    %6 = arith.negf %5 : vector<1x32xf32>
    %7 = math.exp %6 : vector<1x32xf32>
    %cst_4 = arith.constant 1.000000e+00 : f32
    %8 = vector.broadcast %cst_4 : f32 to vector<1x32xf32>
    %9 = arith.addf %8, %7 : vector<1x32xf32>
    %10 = arith.divf %8, %9 : vector<1x32xf32>
    %c0_5 = arith.constant 0 : index
    %c0_6 = arith.constant 0 : index
    %11 = vector.load %arg4[%c0_5, %c0_6] : memref<1x32xf32, #tpu.memory_space<vmem>>, vector<1x32xf32>
    tpu.vector_store %arg4[%c0_5, %c0_6], %10 {strides = array<i32>} : memref<1x32xf32, #tpu.memory_space<vmem>>, vector<1x32xf32>,
    return
  }
  func.func @transform_0(%arg0: i32) -> (i32, i32) {
    %c0_i32 = arith.constant 0 : i32
    %c0_i32_0 = arith.constant 0 : i32
    return %arg0, %c0_i32 : i32, i32
  }
  func.func @transform_1(%arg0: i32) -> (i32, i32) {
    %c0_i32 = arith.constant 0 : i32
    %c0_i32_0 = arith.constant 0 : i32
    %c0_i32_1 = arith.constant 0 : i32
    return %c0_i32, %c0_i32_0 : i32, i32
  }
  func.func @transform_2(%arg0: i32) -> i32 {
    %c0_i32 = arith.constant 0 : i32
    %c0_i32_0 = arith.constant 0 : i32
    return %c0_i32 : i32
  }
  func.func @transform_3(%arg0: i32) -> (i32, i32) {
    %c0_i32 = arith.constant 0 : i32
    %c0_i32_0 = arith.constant 0 : i32
    return %c0_i32, %arg0 : i32, i32
  }
}

module attributes {stable_mosaic.version = 11 : i64} {
  func.func @_fused_head_kernel(%arg0: i32, %arg1: memref<4x32x128xf32, #tpu.memory_space<vmem>>, %arg2: memref<4x4x128xf32, #tpu.memory_space<vmem>>, %arg3: memref<4x16x128xf32, #tpu.memory_space<vmem>>, %arg4: memref<4x8x128xf32, #tpu.memory_space<vmem>>, %arg5: memref<4x4x128xf32, #tpu.memory_space<vmem>>, %arg6: memref<128x128xf32, #tpu.memory_space<vmem>>, %arg7: memref<1x128xf32, #tpu.memory_space<vmem>>, %arg8: memref<128x128xf32, #tpu.memory_space<vmem>>, %arg9: memref<1x128xf32, #tpu.memory_space<vmem>>, %arg10: memref<128x8xf32, #tpu.memory_space<vmem>>, %arg11: memref<1x8xf32, #tpu.memory_space<vmem>>, %arg12: memref<4x8xf32, #tpu.memory_space<vmem>>, %arg13: memref<40x128xf32, #tpu.memory_space<vmem>>) attributes {dimension_semantics = [#tpu.dimension_semantics<arbitrary>], iteration_bounds = array<i64: 1>, scalar_prefetch = 0 : i64, scratch_operands = 1 : i64, tpu.core_type = #tpu.core_type<tc>, window_params = [{transform_indices = @transform_0, window_bounds = array<i64: 4, 32, 128>}, {pipeline_mode = #tpu.pipeline_mode<synchronous>, transform_indices = @transform_1, window_bounds = array<i64: 4, 4, 128>}, {pipeline_mode = #tpu.pipeline_mode<synchronous>, transform_indices = @transform_2, window_bounds = array<i64: 4, 16, 128>}, {pipeline_mode = #tpu.pipeline_mode<synchronous>, transform_indices = @transform_3, window_bounds = array<i64: 4, 8, 128>}, {pipeline_mode = #tpu.pipeline_mode<synchronous>, transform_indices = @transform_4, window_bounds = array<i64: 4, 4, 128>}, {pipeline_mode = #tpu.pipeline_mode<synchronous>, transform_indices = @transform_5, window_bounds = array<i64: 128, 128>}, {pipeline_mode = #tpu.pipeline_mode<synchronous>, transform_indices = @transform_6, window_bounds = array<i64: 1, 128>}, {pipeline_mode = #tpu.pipeline_mode<synchronous>, transform_indices = @transform_7, window_bounds = array<i64: 128, 128>}, {pipeline_mode = #tpu.pipeline_mode<synchronous>, transform_indices = @transform_8, window_bounds = array<i64: 1, 128>}, {pipeline_mode = #tpu.pipeline_mode<synchronous>, transform_indices = @transform_9, window_bounds = array<i64: 128, 8>}, {pipeline_mode = #tpu.pipeline_mode<synchronous>, transform_indices = @transform_10, window_bounds = array<i64: 1, 8>}, {pipeline_mode = #tpu.pipeline_mode<synchronous>, transform_indices = @transform_11, window_bounds = array<i64: 4, 8>}]} {
    %c0_i32 = arith.constant 0 : i32
    %0 = arith.cmpi eq, %arg0, %c0_i32 : i32
    %1 = arith.extui %0 : i1 to i32
    %c0_i32_0 = arith.constant 0 : i32
    %2 = arith.cmpi ne, %1, %c0_i32_0 : i32
    scf.if %2 {
      %cst_9 = arith.constant 0.000000e+00 : f32
      %11 = vector.broadcast %cst_9 : f32 to vector<40x128xf32>
      %c0_10 = arith.constant 0 : index
      %c0_11 = arith.constant 0 : index
      %12 = vector.load %arg13[%c0_10, %c0_11] : memref<40x128xf32, #tpu.memory_space<vmem>>, vector<40x128xf32>
      tpu.vector_store %arg13[%c0_10, %c0_11], %11 {strides = array<i32>} : memref<40x128xf32, #tpu.memory_space<vmem>>, vector<40x128xf32>,
      %cst_12 = arith.constant 0xFF800000 : f32
      %13 = vector.broadcast %cst_12 : f32 to vector<4x128xf32>
      %c0_13 = arith.constant 0 : index
      %c0_14 = arith.constant 0 : index
      %14 = vector.load %arg13[%c0_13, %c0_14] : memref<40x128xf32, #tpu.memory_space<vmem>>, vector<4x128xf32>
      tpu.vector_store %arg13[%c0_13, %c0_14], %13 {strides = array<i32>} : memref<40x128xf32, #tpu.memory_space<vmem>>, vector<4x128xf32>,
    } else {
    }
    %c0 = arith.constant 0 : index
    %c0_1 = arith.constant 0 : index
    %3 = vector.load %arg13[%c0, %c0_1] : memref<40x128xf32, #tpu.memory_space<vmem>>, vector<4x128xf32>
    %c0_2 = arith.constant 0 : index
    %c0_3 = arith.constant 0 : index
    %c0_4 = arith.constant 0 : index
    %4 = vector.load %arg1[%c0_2, %c0_3, %c0_4] : memref<4x32x128xf32, #tpu.memory_space<vmem>>, vector<4x32x128xf32>
    %cst = arith.constant dense<0xFF800000> : vector<4x128xf32>
    %5 = vector.multi_reduction <maximumf>, %4, %cst [1] : vector<4x32x128xf32> to vector<4x128xf32>
    %6 = arith.maximumf %3, %5 : vector<4x128xf32>
    %c0_5 = arith.constant 0 : index
    %c0_6 = arith.constant 0 : index
    %7 = vector.load %arg13[%c0_5, %c0_6] : memref<40x128xf32, #tpu.memory_space<vmem>>, vector<4x128xf32>
    tpu.vector_store %arg13[%c0_5, %c0_6], %6 {strides = array<i32>} : memref<40x128xf32, #tpu.memory_space<vmem>>, vector<4x128xf32>,
    %c0_i32_7 = arith.constant 0 : i32
    %8 = arith.cmpi eq, %arg0, %c0_i32_7 : i32
    %9 = arith.extui %8 : i1 to i32
    %c0_i32_8 = arith.constant 0 : i32
    %10 = arith.cmpi ne, %9, %c0_i32_8 : i32
    scf.if %10 {
      %c0_9 = arith.constant 0 : index
      %c0_10 = arith.constant 0 : index
      %c0_11 = arith.constant 0 : index
      %11 = vector.load %arg2[%c0_9, %c0_10, %c0_11] : memref<4x4x128xf32, #tpu.memory_space<vmem>>, vector<4x4x128xf32>
      %cst_12 = arith.constant dense<0xFF800000> : vector<4x128xf32>
      %12 = vector.multi_reduction <maximumf>, %11, %cst_12 [1] : vector<4x4x128xf32> to vector<4x128xf32>
      %c8 = arith.constant 8 : index
      %c0_13 = arith.constant 0 : index
      %13 = vector.load %arg13[%c8, %c0_13] : memref<40x128xf32, #tpu.memory_space<vmem>>, vector<4x128xf32>
      tpu.vector_store %arg13[%c8, %c0_13], %12 {strides = array<i32>} : memref<40x128xf32, #tpu.memory_space<vmem>>, vector<4x128xf32>,
      %c0_14 = arith.constant 0 : index
      %c0_15 = arith.constant 0 : index
      %c0_16 = arith.constant 0 : index
      %14 = vector.load %arg3[%c0_14, %c0_15, %c0_16] : memref<4x16x128xf32, #tpu.memory_space<vmem>>, vector<4x16x128xf32>
      %cst_17 = arith.constant dense<0xFF800000> : vector<4x128xf32>
      %15 = vector.multi_reduction <maximumf>, %14, %cst_17 [1] : vector<4x16x128xf32> to vector<4x128xf32>
      %c16 = arith.constant 16 : index
      %c0_18 = arith.constant 0 : index
      %16 = vector.load %arg13[%c16, %c0_18] : memref<40x128xf32, #tpu.memory_space<vmem>>, vector<4x128xf32>
      tpu.vector_store %arg13[%c16, %c0_18], %15 {strides = array<i32>} : memref<40x128xf32, #tpu.memory_space<vmem>>, vector<4x128xf32>,
      %c0_19 = arith.constant 0 : index
      %c0_20 = arith.constant 0 : index
      %c0_21 = arith.constant 0 : index
      %17 = vector.load %arg4[%c0_19, %c0_20, %c0_21] : memref<4x8x128xf32, #tpu.memory_space<vmem>>, vector<4x8x128xf32>
      %cst_22 = arith.constant dense<0xFF800000> : vector<4x128xf32>
      %18 = vector.multi_reduction <maximumf>, %17, %cst_22 [1] : vector<4x8x128xf32> to vector<4x128xf32>
      %c24 = arith.constant 24 : index
      %c0_23 = arith.constant 0 : index
      %19 = vector.load %arg13[%c24, %c0_23] : memref<40x128xf32, #tpu.memory_space<vmem>>, vector<4x128xf32>
      tpu.vector_store %arg13[%c24, %c0_23], %18 {strides = array<i32>} : memref<40x128xf32, #tpu.memory_space<vmem>>, vector<4x128xf32>,
      %c0_24 = arith.constant 0 : index
      %c0_25 = arith.constant 0 : index
      %c0_26 = arith.constant 0 : index
      %20 = vector.load %arg5[%c0_24, %c0_25, %c0_26] : memref<4x4x128xf32, #tpu.memory_space<vmem>>, vector<4x4x128xf32>
      %cst_27 = arith.constant dense<0xFF800000> : vector<4x128xf32>
      %21 = vector.multi_reduction <maximumf>, %20, %cst_27 [1] : vector<4x4x128xf32> to vector<4x128xf32>
      %c32 = arith.constant 32 : index
      %c0_28 = arith.constant 0 : index
      %22 = vector.load %arg13[%c32, %c0_28] : memref<40x128xf32, #tpu.memory_space<vmem>>, vector<4x128xf32>
      tpu.vector_store %arg13[%c32, %c0_28], %21 {strides = array<i32>} : memref<40x128xf32, #tpu.memory_space<vmem>>, vector<4x128xf32>,
      %c0_29 = arith.constant 0 : index
      %c0_30 = arith.constant 0 : index
      %23 = vector.load %arg13[%c0_29, %c0_30] : memref<40x128xf32, #tpu.memory_space<vmem>>, vector<40x128xf32>
      %c0_31 = arith.constant 0 : index
      %c0_32 = arith.constant 0 : index
      %24 = vector.load %arg6[%c0_31, %c0_32] : memref<128x128xf32, #tpu.memory_space<vmem>>, vector<128x128xf32>
      %cst_33 = arith.constant dense<0.000000e+00> : vector<40x128xf32>
      %25 = tpu.matmul %23, %24, %cst_33 {dimension_numbers = #tpu.dot_dimension_numbers<[1], [0], [0], [1], [0, 0, 1, 1], [], []>} : vector<40x128xf32>, vector<128x128xf32>, vector<40x128xf32> -> vector<40x128xf32>
      %c0_34 = arith.constant 0 : index
      %c0_35 = arith.constant 0 : index
      %26 = vector.load %arg7[%c0_34, %c0_35] : memref<1x128xf32, #tpu.memory_space<vmem>>, vector<1x128xf32>
      %27 = vector.broadcast %26 : vector<1x128xf32> to vector<40x128xf32>
      %28 = arith.addf %25, %27 : vector<40x128xf32>
      %cst_36 = arith.constant 0.000000e+00 : f32
      %29 = vector.broadcast %cst_36 : f32 to vector<40x128xf32>
      %30 = arith.maximumf %28, %29 : vector<40x128xf32>
      %c0_37 = arith.constant 0 : index
      %c0_38 = arith.constant 0 : index
      %31 = vector.load %arg8[%c0_37, %c0_38] : memref<128x128xf32, #tpu.memory_space<vmem>>, vector<128x128xf32>
      %cst_39 = arith.constant dense<0.000000e+00> : vector<40x128xf32>
      %32 = tpu.matmul %30, %31, %cst_39 {dimension_numbers = #tpu.dot_dimension_numbers<[1], [0], [0], [1], [0, 0, 1, 1], [], []>} : vector<40x128xf32>, vector<128x128xf32>, vector<40x128xf32> -> vector<40x128xf32>
      %c0_40 = arith.constant 0 : index
      %c0_41 = arith.constant 0 : index
      %33 = vector.load %arg9[%c0_40, %c0_41] : memref<1x128xf32, #tpu.memory_space<vmem>>, vector<1x128xf32>
      %34 = vector.broadcast %33 : vector<1x128xf32> to vector<40x128xf32>
      %35 = arith.addf %32, %34 : vector<40x128xf32>
      %36 = vector.extract_strided_slice %35 {offsets = [0, 0], sizes = [8, 128], strides = [1, 1]} : vector<40x128xf32> to vector<8x128xf32>
      %37 = vector.extract_strided_slice %35 {offsets = [8, 0], sizes = [8, 128], strides = [1, 1]} : vector<40x128xf32> to vector<8x128xf32>
      %38 = arith.maximumf %36, %37 : vector<8x128xf32>
      %39 = vector.extract_strided_slice %35 {offsets = [16, 0], sizes = [8, 128], strides = [1, 1]} : vector<40x128xf32> to vector<8x128xf32>
      %40 = arith.maximumf %38, %39 : vector<8x128xf32>
      %41 = vector.extract_strided_slice %35 {offsets = [24, 0], sizes = [8, 128], strides = [1, 1]} : vector<40x128xf32> to vector<8x128xf32>
      %42 = arith.maximumf %40, %41 : vector<8x128xf32>
      %43 = vector.extract_strided_slice %35 {offsets = [32, 0], sizes = [8, 128], strides = [1, 1]} : vector<40x128xf32> to vector<8x128xf32>
      %44 = arith.maximumf %42, %43 : vector<8x128xf32>
      %cst_42 = arith.constant 0.000000e+00 : f32
      %45 = vector.broadcast %cst_42 : f32 to vector<8x128xf32>
      %cst_43 = arith.constant 0.000000e+00 : f32
      %46 = vector.broadcast %cst_43 : f32 to vector<8x128xf32>
      %47 = vector.extract_strided_slice %35 {offsets = [0, 0], sizes = [8, 128], strides = [1, 1]} : vector<40x128xf32> to vector<8x128xf32>
      %48 = arith.subf %47, %44 : vector<8x128xf32>
      %49 = math.exp %48 : vector<8x128xf32>
      %50 = arith.addf %45, %49 : vector<8x128xf32>
      %51 = vector.extract_strided_slice %23 {offsets = [0, 0], sizes = [8, 128], strides = [1, 1]} : vector<40x128xf32> to vector<8x128xf32>
      %52 = arith.mulf %49, %51 : vector<8x128xf32>
      %53 = arith.addf %46, %52 : vector<8x128xf32>
      %54 = vector.extract_strided_slice %35 {offsets = [8, 0], sizes = [8, 128], strides = [1, 1]} : vector<40x128xf32> to vector<8x128xf32>
      %55 = arith.subf %54, %44 : vector<8x128xf32>
      %56 = math.exp %55 : vector<8x128xf32>
      %57 = arith.addf %50, %56 : vector<8x128xf32>
      %58 = vector.extract_strided_slice %23 {offsets = [8, 0], sizes = [8, 128], strides = [1, 1]} : vector<40x128xf32> to vector<8x128xf32>
      %59 = arith.mulf %56, %58 : vector<8x128xf32>
      %60 = arith.addf %53, %59 : vector<8x128xf32>
      %61 = vector.extract_strided_slice %35 {offsets = [16, 0], sizes = [8, 128], strides = [1, 1]} : vector<40x128xf32> to vector<8x128xf32>
      %62 = arith.subf %61, %44 : vector<8x128xf32>
      %63 = math.exp %62 : vector<8x128xf32>
      %64 = arith.addf %57, %63 : vector<8x128xf32>
      %65 = vector.extract_strided_slice %23 {offsets = [16, 0], sizes = [8, 128], strides = [1, 1]} : vector<40x128xf32> to vector<8x128xf32>
      %66 = arith.mulf %63, %65 : vector<8x128xf32>
      %67 = arith.addf %60, %66 : vector<8x128xf32>
      %68 = vector.extract_strided_slice %35 {offsets = [24, 0], sizes = [8, 128], strides = [1, 1]} : vector<40x128xf32> to vector<8x128xf32>
      %69 = arith.subf %68, %44 : vector<8x128xf32>
      %70 = math.exp %69 : vector<8x128xf32>
      %71 = arith.addf %64, %70 : vector<8x128xf32>
      %72 = vector.extract_strided_slice %23 {offsets = [24, 0], sizes = [8, 128], strides = [1, 1]} : vector<40x128xf32> to vector<8x128xf32>
      %73 = arith.mulf %70, %72 : vector<8x128xf32>
      %74 = arith.addf %67, %73 : vector<8x128xf32>
      %75 = vector.extract_strided_slice %35 {offsets = [32, 0], sizes = [8, 128], strides = [1, 1]} : vector<40x128xf32> to vector<8x128xf32>
      %76 = arith.subf %75, %44 : vector<8x128xf32>
      %77 = math.exp %76 : vector<8x128xf32>
      %78 = arith.addf %71, %77 : vector<8x128xf32>
      %79 = vector.extract_strided_slice %23 {offsets = [32, 0], sizes = [8, 128], strides = [1, 1]} : vector<40x128xf32> to vector<8x128xf32>
      %80 = arith.mulf %77, %79 : vector<8x128xf32>
      %81 = arith.addf %74, %80 : vector<8x128xf32>
      %82 = arith.divf %81, %78 : vector<8x128xf32>
      %c0_44 = arith.constant 0 : index
      %c0_45 = arith.constant 0 : index
      %83 = vector.load %arg10[%c0_44, %c0_45] : memref<128x8xf32, #tpu.memory_space<vmem>>, vector<128x8xf32>
      %cst_46 = arith.constant dense<0.000000e+00> : vector<8x8xf32>
      %84 = tpu.matmul %82, %83, %cst_46 {dimension_numbers = #tpu.dot_dimension_numbers<[1], [0], [0], [1], [0, 0, 1, 1], [], []>} : vector<8x128xf32>, vector<128x8xf32>, vector<8x8xf32> -> vector<8x8xf32>
      %c0_47 = arith.constant 0 : index
      %c0_48 = arith.constant 0 : index
      %85 = vector.load %arg11[%c0_47, %c0_48] : memref<1x8xf32, #tpu.memory_space<vmem>>, vector<1x8xf32>
      %86 = vector.broadcast %85 : vector<1x8xf32> to vector<8x8xf32>
      %87 = arith.addf %84, %86 : vector<8x8xf32>
      %88 = vector.extract_strided_slice %87 {offsets = [0, 0], sizes = [4, 8], strides = [1, 1]} : vector<8x8xf32> to vector<4x8xf32>
      %c0_49 = arith.constant 0 : index
      %c0_50 = arith.constant 0 : index
      %89 = vector.load %arg12[%c0_49, %c0_50] : memref<4x8xf32, #tpu.memory_space<vmem>>, vector<4x8xf32>
      tpu.vector_store %arg12[%c0_49, %c0_50], %88 {strides = array<i32>} : memref<4x8xf32, #tpu.memory_space<vmem>>, vector<4x8xf32>,
    } else {
    }
    return
  }
  func.func @transform_0(%arg0: i32) -> (i32, i32, i32) {
    %c0_i32 = arith.constant 0 : i32
    %c0_i32_0 = arith.constant 0 : i32
    %c0_i32_1 = arith.constant 0 : i32
    return %c0_i32, %arg0, %c0_i32_0 : i32, i32, i32
  }
  func.func @transform_1(%arg0: i32) -> (i32, i32, i32) {
    %c0_i32 = arith.constant 0 : i32
    %c0_i32_0 = arith.constant 0 : i32
    %c0_i32_1 = arith.constant 0 : i32
    %c0_i32_2 = arith.constant 0 : i32
    return %c0_i32, %c0_i32_0, %c0_i32_1 : i32, i32, i32
  }
  func.func @transform_2(%arg0: i32) -> (i32, i32, i32) {
    %c0_i32 = arith.constant 0 : i32
    %c0_i32_0 = arith.constant 0 : i32
    %c0_i32_1 = arith.constant 0 : i32
    %c0_i32_2 = arith.constant 0 : i32
    return %c0_i32, %c0_i32_0, %c0_i32_1 : i32, i32, i32
  }
  func.func @transform_3(%arg0: i32) -> (i32, i32, i32) {
    %c0_i32 = arith.constant 0 : i32
    %c0_i32_0 = arith.constant 0 : i32
    %c0_i32_1 = arith.constant 0 : i32
    %c0_i32_2 = arith.constant 0 : i32
    return %c0_i32, %c0_i32_0, %c0_i32_1 : i32, i32, i32
  }
  func.func @transform_4(%arg0: i32) -> (i32, i32, i32) {
    %c0_i32 = arith.constant 0 : i32
    %c0_i32_0 = arith.constant 0 : i32
    %c0_i32_1 = arith.constant 0 : i32
    %c0_i32_2 = arith.constant 0 : i32
    return %c0_i32, %c0_i32_0, %c0_i32_1 : i32, i32, i32
  }
  func.func @transform_5(%arg0: i32) -> (i32, i32) {
    %c0_i32 = arith.constant 0 : i32
    %c0_i32_0 = arith.constant 0 : i32
    %c0_i32_1 = arith.constant 0 : i32
    return %c0_i32, %c0_i32_0 : i32, i32
  }
  func.func @transform_6(%arg0: i32) -> (i32, i32) {
    %c0_i32 = arith.constant 0 : i32
    %c0_i32_0 = arith.constant 0 : i32
    %c0_i32_1 = arith.constant 0 : i32
    return %c0_i32, %c0_i32_0 : i32, i32
  }
  func.func @transform_7(%arg0: i32) -> (i32, i32) {
    %c0_i32 = arith.constant 0 : i32
    %c0_i32_0 = arith.constant 0 : i32
    %c0_i32_1 = arith.constant 0 : i32
    return %c0_i32, %c0_i32_0 : i32, i32
  }
  func.func @transform_8(%arg0: i32) -> (i32, i32) {
    %c0_i32 = arith.constant 0 : i32
    %c0_i32_0 = arith.constant 0 : i32
    %c0_i32_1 = arith.constant 0 : i32
    return %c0_i32, %c0_i32_0 : i32, i32
  }
  func.func @transform_9(%arg0: i32) -> (i32, i32) {
    %c0_i32 = arith.constant 0 : i32
    %c0_i32_0 = arith.constant 0 : i32
    %c0_i32_1 = arith.constant 0 : i32
    return %c0_i32, %c0_i32_0 : i32, i32
  }
  func.func @transform_10(%arg0: i32) -> (i32, i32) {
    %c0_i32 = arith.constant 0 : i32
    %c0_i32_0 = arith.constant 0 : i32
    %c0_i32_1 = arith.constant 0 : i32
    return %c0_i32, %c0_i32_0 : i32, i32
  }
  func.func @transform_11(%arg0: i32) -> (i32, i32) {
    %c0_i32 = arith.constant 0 : i32
    %c0_i32_0 = arith.constant 0 : i32
    %c0_i32_1 = arith.constant 0 : i32
    return %c0_i32, %c0_i32_0 : i32, i32
  }
}

</mosaic_0001>

<bundles_post_ra>
// kernel: squeeze.5
= control target key start
LH: loop header
LB: loop body
LE: loop exit
PB: predicated region body
PF: predicated region fallthrough
CT: control target
= control target key end

     0   :  { %s40_s8 = smov 32   ;;  %vm8_vm0 = vcmask 261120   ;;  %s41_s9 = smov 64   ;;  %s58_s0 = inlined_call_operand.vmem [shape: f32[128], index: 0, kind: input, shape index: {}]   ;;  %s59_s1 = inlined_call_operand.vmem [shape: f32[4,32], index: 1, kind: output, shape index: {}]  }
   0x1   :  { %v5_v0 = vld [vmem:[%s58_s0] sm:$0x1]  ;;  %s39_s0 = smov 96  }
   0x2   :  { %6 = vst [vmem:[#allocation1] sm:$0x1] %v5_v0 }
   0x9   :  { %v10_v1 = vld [vmem:[#allocation1] sm:$0x1]  }
   0xa   :  { %v22_v2 = vld [vmem:[#allocation1] sm:$0x1]   ;;  %11 = vrot.lane.b32.xlu0 %v10_v1, %s39_s0 }
   0xb   :  { %23 = vrot.lane.b32.xlu1 %v22_v2, %s40_s8  ;;  %v7_v3 = vld [vmem:[#allocation1] sm:$0x1]  }
   0xc   :  { %v16_v4 = vld [vmem:[#allocation1] sm:$0x1]   ;;  %9 = vst.msk [vmem:[#allocation0] sm:$0x1] %vm8_vm0, %v7_v3  }
   0xe   :  { %17 = vrot.lane.b32.xlu0 %v16_v4, %s41_s9 }
  0x7c   :  { %v12_v5 = vpop.permute.xlu0 %11  }
  0x7d   :  { %v24_v6 = vpop.permute.xlu1 %23   ;;  %15 = vst.msk [vmem:[#allocation0 + $0x1] sm:$0x1] %vm8_vm0, %v12_v5  }
  0x7e   :  { %27 = vst.msk [vmem:[#allocation0 + $0x3] sm:$0x1] %vm8_vm0, %v24_v6  }
  0x80   :  { %v18_v7 = vpop.permute.xlu0 %17  }
  0x81   :  { %21 = vst.msk [vmem:[#allocation0 + $0x2] sm:$0x1] %vm8_vm0, %v18_v7  }
  0x88   :  { %v32_v8 = vld [vmem:[#allocation0] sm:$0xf] }
  0x89   :  { %35 = vst [vmem:[%s59_s1] sm:$0xf] %v32_v8 }

// kernel: classify_forward.4
= control target key start
LH: loop header
LB: loop body
LE: loop exit
PB: predicated region body
PF: predicated region fallthrough
CT: control target
= control target key end

     0   :  { %v186_v0 = vmov 0.0   ;;  %vm187_vm0 = vmmov 0   ;;  %s241_s0 = inlined_call_operand.vmem [shape: bf16[128,128], index: 0, kind: input, shape index: {}]   ;;  %s242_s1 = inlined_call_operand.vmem [shape: bf16[1,128], index: 1, kind: input, shape index: {}]   ;;  %s243_s2 = inlined_call_operand.<no memory space> [shape: f32[1], index: 2, kind: input, shape index: {}]   ;;  %s244_s3 = inlined_call_operand.vmem [shape: f32[1,128], index: 3, kind: output, shape index: {}]  }
   0x1   :  { %152 = vmatprep.subr.bf16.mxu0 %v186_v0  ;;  %v174_v1 = vld [vmem:[%s241_s0 + $0x38] sm:$0xff]   ;;  %168 = vmatprep.mubr.msk.bf16.mxu0 %vm187_vm0, %v186_v0  ;;  %v175_v2 = vld [vmem:[%s241_s0 + $0x30] sm:$0xff]   ;;  %v176_v3 = vld [vmem:[%s241_s0 + $0x28] sm:$0xff]   ;;  %v34_v10 = vstv %s243_s2 }
   0x2   :  { %153 = vmatpush3.bf16.xpose.msra.mxu0 %v174_v1  ;;  %v177_v4 = vld [vmem:[%s241_s0 + $0x20] sm:$0xff]   ;;  %v178_v5 = vld [vmem:[%s241_s0 + $0x18] sm:$0xff]   ;;  %v179_v6 = vld [vmem:[%s241_s0 + $0x10] sm:$0xff]  }
   0x3   :  { %154 = vmatprep.subr.bf16.mxu0 %v186_v0  ;;  %v180_v7 = vld [vmem:[%s241_s0 + $0x8] sm:$0xff]   ;;  %v181_v8 = vld [vmem:[%s241_s0] sm:$0xff]  }
   0x4   :  { %v16_v9 = vld [vmem:[%s242_s1] sm:$0x1] }
   0xa   :  { %155 = vmatpush3.bf16.xpose.msra.mxu0 %v175_v2 }
   0xb   :  { %156 = vmatprep.subr.bf16.mxu0 %v186_v0 }
  0x12   :  { %157 = vmatpush3.bf16.xpose.msra.mxu0 %v176_v3 }
  0x13   :  { %158 = vmatprep.subr.bf16.mxu0 %v186_v0 }
  0x1a   :  { %159 = vmatpush3.bf16.xpose.msra.mxu0 %v177_v4 }
  0x1b   :  { %160 = vmatprep.subr.bf16.mxu0 %v186_v0 }
  0x22   :  { %161 = vmatpush3.bf16.xpose.msra.mxu0 %v178_v5 }
  0x23   :  { %162 = vmatprep.subr.bf16.mxu0 %v186_v0 }
  0x2a   :  { %163 = vmatpush3.bf16.xpose.msra.mxu0 %v179_v6 }
  0x2b   :  { %164 = vmatprep.subr.bf16.mxu0 %v186_v0 }
  0x32   :  { %165 = vmatpush3.bf16.xpose.msra.mxu0 %v180_v7 }
  0x33   :  { %166 = vmatprep.subr.bf16.mxu0 %v186_v0 }
  0x3a   :  { %167 = vmatpush3.bf16.xpose.msra.mxu0 %v181_v8 }
  0x41   :  { %169 = vmatmul.mubr.bf16.vlgmr.msra.gmra.mxu0 %v16_v9 }
 0x101   :  { %v117_v11 = vpop.f32.mrf.mxu0 }
 0x102   :  { %v118_v12 = vadd.f32 %v117_v11, %v34_v10 }
 0x103   :  { %v170_v13 = vpop.f32.mrf.mxu0 }
 0x104   :  { %v142_v14 = vmul.f32 -1.442695, %v118_v12 }
 0x105   :  { %v120_v15 = vpop.f32.mrf.mxu0 }
 0x106   :  { %182 = vpow2.f32 %v142_v14 }
 0x107   :  { %v171_v16 = vpop.f32.mrf.mxu0 }
 0x113   :  { %v183_v17 = vpop.eup %182 }
 0x114   :  { %v126_v18 = vadd.f32 1.0, %v183_v17 }
 0x116   :  { %184 = vrcp.f32 %v126_v18 }
 0x123   :  { %v185_v19 = vpop.eup %184 }
 0x124   :  { %129 = vst [vmem:[%s244_s3] sm:$0x1] %v185_v19 }

// kernel: squeeze.6
= control target key start
LH: loop header
LB: loop body
LE: loop exit
PB: predicated region body
PF: predicated region fallthrough
CT: control target
= control target key end

     0   :  { %s40_s8 = smov 80   ;;  %vm8_vm0 = vcmask 130048   ;;  %s41_s9 = smov 96   ;;  %s58_s0 = inlined_call_operand.vmem [shape: f32[64], index: 0, kind: input, shape index: {}]   ;;  %s59_s1 = inlined_call_operand.vmem [shape: f32[4,16], index: 1, kind: output, shape index: {}]  }
   0x1   :  { %v5_v0 = vld [vmem:[%s58_s0] sm:$0x1]  ;;  %s39_s0 = smov 112  }
   0x2   :  { %6 = vst [vmem:[#allocation1] sm:$0x1] %v5_v0 }
   0x9   :  { %v10_v1 = vld [vmem:[#allocation1] sm:$0x1]  }
   0xa   :  { %v22_v2 = vld [vmem:[#allocation1] sm:$0x1]   ;;  %11 = vrot.lane.b32.xlu0 %v10_v1, %s39_s0 }
   0xb   :  { %23 = vrot.lane.b32.xlu1 %v22_v2, %s40_s8  ;;  %v7_v3 = vld [vmem:[#allocation1] sm:$0x1]  }
   0xc   :  { %v16_v4 = vld [vmem:[#allocation1] sm:$0x1]   ;;  %9 = vst.msk [vmem:[#allocation0] sm:$0x1] %vm8_vm0, %v7_v3  }
   0xe   :  { %17 = vrot.lane.b32.xlu0 %v16_v4, %s41_s9 }
  0x7c   :  { %v12_v5 = vpop.permute.xlu0 %11  }
  0x7d   :  { %v24_v6 = vpop.permute.xlu1 %23   ;;  %15 = vst.msk [vmem:[#allocation0 + $0x1] sm:$0x1] %vm8_vm0, %v12_v5  }
  0x7e   :  { %27 = vst.msk [vmem:[#allocation0 + $0x3] sm:$0x1] %vm8_vm0, %v24_v6  }
  0x80   :  { %v18_v7 = vpop.permute.xlu0 %17  }
  0x81   :  { %21 = vst.msk [vmem:[#allocation0 + $0x2] sm:$0x1] %vm8_vm0, %v18_v7  }
  0x88   :  { %v32_v8 = vld [vmem:[#allocation0] sm:$0xf] }
  0x89   :  { %35 = vst [vmem:[%s59_s1] sm:$0xf] %v32_v8 }

// kernel: classify_forward.5
= control target key start
LH: loop header
LB: loop body
LE: loop exit
PB: predicated region body
PF: predicated region fallthrough
CT: control target
= control target key end

     0   :  { %v135_v0 = vmov 0.0   ;;  %vm136_vm0 = vmmov 0   ;;  %vm97_vm1 = vcmask 516096   ;;  %s178_s0 = inlined_call_operand.vmem [shape: bf16[64,128], index: 0, kind: input, shape index: {}]   ;;  %s179_s1 = inlined_call_operand.vmem [shape: bf16[1,128], index: 1, kind: input, shape index: {}]   ;;  %s180_s2 = inlined_call_operand.<no memory space> [shape: f32[1], index: 2, kind: input, shape index: {}]   ;;  %s181_s3 = inlined_call_operand.vmem [shape: f32[1,64], index: 3, kind: output, shape index: {}]  }
   0x1   :  { %113 = vmatprep.subr.bf16.mxu0 %v135_v0  ;;  %v127_v1 = vld [vmem:[%s178_s0 + $0x18] sm:$0xff]   ;;  %121 = vmatprep.mubr.msk.bf16.mxu0 %vm136_vm0, %v135_v0  ;;  %v128_v2 = vld [vmem:[%s178_s0 + $0x10] sm:$0xff]   ;;  %v129_v3 = vld [vmem:[%s178_s0 + $0x8] sm:$0xff]   ;;  %v26_v6 = vstv %s180_s2 }
   0x2   :  { %114 = vmatpush3.bf16.xpose.msra.mxu0 %v127_v1  ;;  %v130_v4 = vld [vmem:[%s178_s0] sm:$0xff]  }
   0x3   :  { %115 = vmatprep.subr.bf16.mxu0 %v135_v0  ;;  %v16_v5 = vld [vmem:[%s179_s1] sm:$0x1] }
   0xa   :  { %116 = vmatpush3.bf16.xpose.msra.mxu0 %v128_v2 }
   0xb   :  { %117 = vmatprep.subr.bf16.mxu0 %v135_v0 }
  0x12   :  { %118 = vmatpush3.bf16.xpose.msra.mxu0 %v129_v3 }
  0x13   :  { %119 = vmatprep.subr.bf16.mxu0 %v135_v0 }
  0x1a   :  { %120 = vmatpush3.bf16.xpose.msra.mxu0 %v130_v4 }
  0x21   :  { %122 = vmatmul.mubr.bf16.vlgmr.msra.gmra.mxu0 %v16_v5 }
  0xe1   :  { %v85_v7 = vpop.f32.mrf.mxu0 }
  0xe2   :  { %v86_v8 = vadd.f32 %v85_v7, %v26_v6 }
  0xe3   :  { %v123_v9 = vpop.f32.mrf.mxu0 }
  0xe4   :  { %v107_v10 = vmul.f32 -1.442695, %v86_v8 }
  0xe5   :  { %v88_v11 = vpop.f32.mrf.mxu0 }
  0xe6   :  { %131 = vpow2.f32 %v107_v10 }
  0xe7   :  { %v124_v12 = vpop.f32.mrf.mxu0 }
  0xf3   :  { %v132_v13 = vpop.eup %131 }
  0xf4   :  { %v94_v14 = vadd.f32 1.0, %v132_v13 }
  0xf6   :  { %133 = vrcp.f32 %v94_v14 }
 0x103   :  { %v134_v15 = vpop.eup %133 }
 0x104   :  { %98 = vst.msk [vmem:[%s181_s3] sm:$0x1] %vm97_vm1, %v134_v15 }

// kernel: squeeze.7
= control target key start
LH: loop header
LB: loop body
LE: loop exit
PB: predicated region body
PF: predicated region fallthrough
CT: control target
= control target key end

     0   :  { %s40_s8 = smov 104   ;;  %vm8_vm0 = vcmask 64512   ;;  %s41_s9 = smov 112   ;;  %s58_s0 = inlined_call_operand.vmem [shape: f32[32], index: 0, kind: input, shape index: {}]   ;;  %s59_s1 = inlined_call_operand.vmem [shape: f32[4,8], index: 1, kind: output, shape index: {}]  }
   0x1   :  { %v5_v0 = vld [vmem:[%s58_s0] sm:$0x1]  ;;  %s39_s0 = smov 120  }
   0x2   :  { %6 = vst [vmem:[#allocation1] sm:$0x1] %v5_v0 }
   0x9   :  { %v10_v1 = vld [vmem:[#allocation1] sm:$0x1]  }
   0xa   :  { %v22_v2 = vld [vmem:[#allocation1] sm:$0x1]   ;;  %11 = vrot.lane.b32.xlu0 %v10_v1, %s39_s0 }
   0xb   :  { %23 = vrot.lane.b32.xlu1 %v22_v2, %s40_s8  ;;  %v7_v3 = vld [vmem:[#allocation1] sm:$0x1]  }
   0xc   :  { %v16_v4 = vld [vmem:[#allocation1] sm:$0x1]   ;;  %9 = vst.msk [vmem:[#allocation0] sm:$0x1] %vm8_vm0, %v7_v3  }
   0xe   :  { %17 = vrot.lane.b32.xlu0 %v16_v4, %s41_s9 }
  0x7c   :  { %v12_v5 = vpop.permute.xlu0 %11  }
  0x7d   :  { %v24_v6 = vpop.permute.xlu1 %23   ;;  %15 = vst.msk [vmem:[#allocation0 + $0x1] sm:$0x1] %vm8_vm0, %v12_v5  }
  0x7e   :  { %27 = vst.msk [vmem:[#allocation0 + $0x3] sm:$0x1] %vm8_vm0, %v24_v6  }
  0x80   :  { %v18_v7 = vpop.permute.xlu0 %17  }
  0x81   :  { %21 = vst.msk [vmem:[#allocation0 + $0x2] sm:$0x1] %vm8_vm0, %v18_v7  }
  0x88   :  { %v32_v8 = vld [vmem:[#allocation0] sm:$0xf] }
  0x89   :  { %35 = vst [vmem:[%s59_s1] sm:$0xf] %v32_v8 }

// kernel: classify_forward.6
= control target key start
LH: loop header
LB: loop body
LE: loop exit
PB: predicated region body
PF: predicated region fallthrough
CT: control target
= control target key end

     0   :  { %v109_v0 = vmov 0.0   ;;  %vm110_vm0 = vmmov 0   ;;  %vm81_vm1 = vcmask 253952   ;;  %s146_s0 = inlined_call_operand.vmem [shape: bf16[32,128], index: 0, kind: input, shape index: {}]   ;;  %s147_s1 = inlined_call_operand.vmem [shape: bf16[1,128], index: 1, kind: input, shape index: {}]   ;;  %s148_s2 = inlined_call_operand.<no memory space> [shape: f32[1], index: 2, kind: input, shape index: {}]   ;;  %s149_s3 = inlined_call_operand.vmem [shape: f32[1,32], index: 3, kind: output, shape index: {}]  }
   0x1   :  { %93 = vmatprep.subr.bf16.mxu0 %v109_v0  ;;  %v103_v1 = vld [vmem:[%s146_s0 + $0x8] sm:$0xff]   ;;  %97 = vmatprep.mubr.msk.bf16.mxu0 %vm110_vm0, %v109_v0  ;;  %v104_v2 = vld [vmem:[%s146_s0] sm:$0xff]   ;;  %v22_v4 = vstv %s148_s2 }
   0x2   :  { %94 = vmatpush3.bf16.xpose.msra.mxu0 %v103_v1  ;;  %v16_v3 = vld [vmem:[%s147_s1] sm:$0x1] }
   0x3   :  { %95 = vmatprep.subr.bf16.mxu0 %v109_v0 }
   0xa   :  { %96 = vmatpush3.bf16.xpose.msra.mxu0 %v104_v2 }
  0x11   :  { %98 = vmatmul.mubr.bf16.vlgmr.msra.gmra.mxu0 %v16_v3 }
  0xd1   :  { %v69_v5 = vpop.f32.mrf.mxu0 }
  0xd2   :  { %v70_v6 = vadd.f32 %v69_v5, %v22_v4 }
  0xd3   :  { %v99_v7 = vpop.f32.mrf.mxu0 }
  0xd4   :  { %v89_v8 = vmul.f32 -1.442695, %v70_v6 }
  0xd5   :  { %v72_v9 = vpop.f32.mrf.mxu0 }
  0xd6   :  { %105 = vpow2.f32 %v89_v8 }
  0xd7   :  { %v100_v10 = vpop.f32.mrf.mxu0 }
  0xe3   :  { %v106_v11 = vpop.eup %105 }
  0xe4   :  { %v78_v12 = vadd.f32 1.0, %v106_v11 }
  0xe6   :  { %107 = vrcp.f32 %v78_v12 }
  0xf3   :  { %v108_v13 = vpop.eup %107 }
  0xf4   :  { %82 = vst.msk [vmem:[%s149_s3] sm:$0x1] %vm81_vm1, %v108_v13 }

// kernel: classify_forward.7
= control target key start
LH: loop header
LB: loop body
LE: loop exit
PB: predicated region body
PF: predicated region fallthrough
CT: control target
= control target key end

     0   :  { %v893_v1 = vmov 0.0   ;;  %vm894_vm0 = vmmov 0   ;;  %v895_v3 = vmov -inf   ;;  %vm122_vm1 = vcmask 1043456   ;;  %s1339_s0 = inlined_call_operand.vmem [shape: f32[4,32,128], index: 0, kind: input, shape index: {}]   ;;  %s1340_s1 = inlined_call_operand.vmem [shape: f32[4,4,128], index: 1, kind: input, shape index: {}]   ;;  %s1341_s2 = inlined_call_operand.vmem [shape: f32[4,16,128], index: 2, kind: input, shape index: {}]   ;;  %s1342_s3 = inlined_call_operand.vmem [shape: f32[4,8,128], index: 3, kind: input, shape index: {}]   ;;  %s1343_s4 = inlined_call_operand.vmem [shape: f32[4,4,128], index: 4, kind: input, shape index: {}]   ;;  %s1344_s5 = inlined_call_operand.vmem [shape: f32[128,128], index: 5, kind: input, shape index: {}]   ;;  %s1345_s6 = inlined_call_operand.vmem [shape: f32[1,128], index: 6, kind: input, shape index: {}, may-alias: {6,8}]   ;;  %s1346_s7 = inlined_call_operand.vmem [shape: f32[128,128], index: 7, kind: input, shape index: {}]   ;;  %s1347_s8 = inlined_call_operand.vmem [shape: f32[1,128], index: 8, kind: input, shape index: {}, may-alias: {6,8}]   ;;  %s1348_s9 = inlined_call_operand.vmem [shape: f32[128,8], index: 9, kind: input, shape index: {}]   ;;  %s1349_s10 = inlined_call_operand.vmem [shape: f32[1,8], index: 10, kind: input, shape index: {}]   ;;  %s1350_s11 = inlined_call_operand.hbm [shape: f32[4,8], index: 11, kind: output, shape index: {}]  }
   0x1   :  { %v303_v0 = vld [vmem:[%s1344_s5 + $0x78] sm:$0xff]  ;;  %726 = vmatprep.subr.mxu0 %v893_v1  ;;  %43 = vst [vmem:[#allocation2 + $0x8] sm:$0xff] %v893_v1  ;;  %44 = vst [vmem:[#allocation2] sm:$0xff] %v893_v1  ;;  %v302_v2 = vld [vmem:[%s1344_s5 + $0x70] sm:$0xff]  ;;  %758 = vmatprep.mubr.msk.f32.mxu0 %vm894_vm0, %v893_v1  ;;  %vm106_vm2 = vcmask 1041409   ;;  %vm108_vm3 = vcmask 1042434  }
   0x2   :  { %45 = vst [vmem:[#allocation2 + $0x20] sm:$0xff] %v893_v1  ;;  %46 = vst [vmem:[#allocation2 + $0x10] sm:$0xff] %v893_v1  ;;  %727 = vmatpush3.msra.mxu0 %v303_v0  ;;  %773 = vmatprep.subr.mxu1 %v893_v1  ;;  %v301_v4 = vld [vmem:[%s1344_s5 + $0x68] sm:$0xff]  ;;  %v300_v5 = vld [vmem:[%s1344_s5 + $0x60] sm:$0xff]  ;;  %vm110_vm4 = vcmask 1043459  }
   0x3   :  { %47 = vst [vmem:[#allocation2 + $0x18] sm:$0xff] %v893_v1  ;;  %48 = vst [vmem:[#allocation2 + $0x8] sm:$0xf] %v895_v3  ;;  %728 = vmatprep.subr.mxu0 %v893_v1  ;;  %805 = vmatprep.mubr.msk.f32.mxu1 %vm894_vm0, %v893_v1  ;;  %v50_v6 = vld [vmem:[%s1339_s0] sm:$0xff]  ;;  %v51_v7 = vld [vmem:[%s1339_s0 + $0x8] sm:$0xff] }
   0x4   :  { %729 = vmatpush3.msra.mxu0 %v302_v2  ;;  %v299_v8 = vld [vmem:[%s1344_s5 + $0x58] sm:$0xff]  ;;  %v52_v9 = vld [vmem:[%s1339_s0 + $0x10] sm:$0xff]  ;;  %v54_v10 = vld [vmem:[%s1339_s0 + $0x20] sm:$0xff]  ;;  %v66_v11 = vmax.f32 %v50_v6, %v51_v7 }
   0x5   :  { %730 = vmatprep.subr.mxu0 %v893_v1  ;;  %v298_v12 = vld [vmem:[%s1344_s5 + $0x50] sm:$0xff]  ;;  %v53_v13 = vld [vmem:[%s1339_s0 + $0x18] sm:$0xff]  ;;  %v55_v14 = vld [vmem:[%s1339_s0 + $0x28] sm:$0xff] }
   0x6   :  { %731 = vmatpush3.msra.mxu0 %v301_v4  ;;  %v56_v15 = vld [vmem:[%s1339_s0 + $0x30] sm:$0xff]  ;;  %v58_v16 = vld [vmem:[%s1339_s0 + $0x40] sm:$0xff]  ;;  %v59_v17 = vld [vmem:[%s1339_s0 + $0x48] sm:$0xff]  ;;  %v67_v19 = vmax.f32 %v66_v11, %v52_v9  ;;  %v75_v20 = vmax.f32 %v54_v10, %v55_v14 }
   0x7   :  { %732 = vmatprep.subr.mxu0 %v893_v1  ;;  %v60_v18 = vld [vmem:[%s1339_s0 + $0x50] sm:$0xff]  ;;  %v297_v21 = vld [vmem:[%s1344_s5 + $0x48] sm:$0xff]  ;;  %v57_v22 = vld [vmem:[%s1339_s0 + $0x38] sm:$0xff]  ;;  %v84_v24 = vmax.f32 %v58_v16, %v59_v17 }
   0x8   :  { %733 = vmatpush3.msra.mxu0 %v300_v5  ;;  %v62_v23 = vld [vmem:[%s1339_s0 + $0x60] sm:$0xff]  ;;  %v61_v25 = vld [vmem:[%s1339_s0 + $0x58] sm:$0xff]  ;;  %v63_v26 = vld [vmem:[%s1339_s0 + $0x68] sm:$0xff]  ;;  %v68_v28 = vmax.f32 %v67_v19, %v53_v13  ;;  %v76_v29 = vmax.f32 %v75_v20, %v56_v15 }
   0x9   :  { %734 = vmatprep.subr.mxu0 %v893_v1  ;;  %v64_v27 = vld [vmem:[%s1339_s0 + $0x70] sm:$0xff]  ;;  %v85_v30 = vmax.f32 %v84_v24, %v60_v18  ;;  %v93_v31 = vmax.f32 %v62_v23, %v63_v26  ;;  %v118_v32 = vld [vmem:[%s1340_s1] sm:$0xf]  ;;  %v119_v33 = vld [vmem:[%s1340_s1 + $0x4] sm:$0xf] }
   0xa   :  { %735 = vmatpush3.msra.mxu0 %v299_v8  ;;  %v120_v34 = vld [vmem:[%s1340_s1 + $0x8] sm:$0xf]  ;;  %v65_v35 = vld [vmem:[%s1339_s0 + $0x78] sm:$0xff]  ;;  %v69_v36 = vrot.slane %v68_v28, 4  ;;  %v77_v37 = vmax.f32 %v76_v29, %v57_v22  ;;  %v121_v38 = vld [vmem:[%s1340_s1 + $0xc] sm:$0xf] }
   0xb   :  { %736 = vmatprep.subr.mxu0 %v893_v1  ;;  %v123_v39 = vsel %vm122_vm1, %v118_v32, -inf  ;;  %v130_v40 = vsel %vm122_vm1, %v119_v33, -inf  ;;  %v296_v41 = vld [vmem:[%s1344_s5 + $0x40] sm:$0xff]  ;;  %v86_v42 = vmax.f32 %v85_v30, %v61_v25  ;;  %v94_v43 = vmax.f32 %v93_v31, %v64_v27  ;;  %v295_v50 = vld [vmem:[%s1344_s5 + $0x38] sm:$0xff]  ;;  %v294_v60 = vld [vmem:[%s1344_s5 + $0x30] sm:$0xff] }
   0xc   :  { %737 = vmatpush3.msra.mxu0 %v298_v12  ;;  %v124_v44 = vrot.slane %v123_v39, 4  ;;  %v131_v45 = vrot.slane %v130_v40, 4  ;;  %v70_v46 = vmax.f32 %v68_v28, %v69_v36  ;;  %v78_v47 = vrot.slane %v77_v37, 4  ;;  %v421_v59 = vld [vmem:[%s1346_s7 + $0x78] sm:$0xff]  ;;  %v420_v2 = vld [vmem:[%s1346_s7 + $0x70] sm:$0xff]  ;;  %v419_v7 = vld [vmem:[%s1346_s7 + $0x68] sm:$0xff] }
   0xd   :  { %738 = vmatprep.subr.mxu0 %v893_v1  ;;  %v137_v48 = vsel %vm122_vm1, %v120_v34, -inf  ;;  %v144_v49 = vsel %vm122_vm1, %v121_v38, -inf  ;;  %v87_v51 = vrot.slane %v86_v42, 4  ;;  %v95_v52 = vmax.f32 %v94_v43, %v65_v35  ;;  %774 = vmatpush3.msra.mxu1 %v421_v59  ;;  %v293_v8 = vld [vmem:[%s1344_s5 + $0x28] sm:$0xff]  ;;  %v418_v17 = vld [vmem:[%s1346_s7 + $0x60] sm:$0xff]  ;;  %v162_v29 = vld [vmem:[%s1341_s2 + $0x10] sm:$0xff] }
   0xe   :  { %739 = vmatpush3.msra.mxu0 %v297_v21  ;;  %v125_v53 = vmax.f32 %v123_v39, %v124_v44  ;;  %v132_v54 = vmax.f32 %v130_v40, %v131_v45  ;;  %v71_v55 = vrot.slane %v70_v46, 2  ;;  %v79_v56 = vmax.f32 %v77_v37, %v78_v47  ;;  %775 = vmatprep.subr.mxu1 %v893_v1  ;;  %v292_v18 = vld [vmem:[%s1344_s5 + $0x20] sm:$0xff]  ;;  %v161_v24 = vld [vmem:[%s1341_s2 + $0x8] sm:$0xff]  ;;  %v163_v30 = vld [vmem:[%s1341_s2 + $0x18] sm:$0xff] }
   0xf   :  { %740 = vmatprep.subr.mxu0 %v893_v1  ;;  %v138_v57 = vrot.slane %v137_v48, 4  ;;  %v145_v58 = vrot.slane %v144_v49, 4  ;;  %v88_v61 = vmax.f32 %v86_v42, %v87_v51  ;;  %v96_v62 = vrot.slane %v95_v52, 4  ;;  %776 = vmatpush3.msra.mxu1 %v420_v2  ;;  %v160_v23 = vld [vmem:[%s1341_s2] sm:$0xff]  ;;  %v417_v31 = vld [vmem:[%s1346_s7 + $0x58] sm:$0xff]  ;;  %v290_v33 = vld [vmem:[%s1344_s5 + $0x10] sm:$0xff] }
  0x10   :  { %741 = vmatpush3.msra.mxu0 %v296_v41  ;;  %v126_v63 = vrot.slane %v125_v53, 2  ;;  %v133_v0 = vrot.slane %v132_v54, 2  ;;  %v72_v3 = vmax.f32 %v70_v46, %v71_v55  ;;  %v80_v4 = vrot.slane %v79_v56, 2  ;;  %777 = vmatprep.subr.mxu1 %v893_v1  ;;  %v291_v32 = vld [vmem:[%s1344_s5 + $0x18] sm:$0xff] }
  0x11   :  { %742 = vmatprep.subr.mxu0 %v893_v1  ;;  %v139_v5 = vmax.f32 %v137_v48, %v138_v57  ;;  %v146_v6 = vmax.f32 %v144_v49, %v145_v58  ;;  %v89_v9 = vrot.slane %v88_v61, 2  ;;  %v97_v10 = vmax.f32 %v95_v52, %v96_v62  ;;  %778 = vmatpush3.msra.mxu1 %v419_v7 }
  0x12   :  { %743 = vmatpush3.msra.mxu0 %v295_v50  ;;  %v127_v11 = vmax.f32 %v125_v53, %v126_v63  ;;  %v134_v12 = vmax.f32 %v132_v54, %v133_v0  ;;  %v73_v13 = vrot.slane %v72_v3, 1  ;;  %v81_v14 = vmax.f32 %v79_v56, %v80_v4  ;;  %779 = vmatprep.subr.mxu1 %v893_v1 }
  0x13   :  { %744 = vmatprep.subr.mxu0 %v893_v1  ;;  %v140_v15 = vrot.slane %v139_v5, 2  ;;  %v147_v16 = vrot.slane %v146_v6, 2  ;;  %v90_v19 = vmax.f32 %v88_v61, %v89_v9  ;;  %v98_v20 = vrot.slane %v97_v10, 2  ;;  %780 = vmatpush3.msra.mxu1 %v418_v17 }
  0x14   :  { %745 = vmatpush3.msra.mxu0 %v294_v60  ;;  %v128_v21 = vrot.slane %v127_v11, 1  ;;  %v135_v22 = vrot.slane %v134_v12, 1  ;;  %v74_v25 = vmax.f32 %v72_v3, %v73_v13  ;;  %v82_v26 = vrot.slane %v81_v14, 1 }
  0x15   :  { %746 = vmatprep.subr.mxu0 %v893_v1  ;;  %v141_v27 = vmax.f32 %v139_v5, %v140_v15  ;;  %v148_v28 = vmax.f32 %v146_v6, %v147_v16  ;;  %v91_v34 = vrot.slane %v90_v19, 1  ;;  %v99_v35 = vmax.f32 %v97_v10, %v98_v20 }
  0x16   :  { %747 = vmatpush3.msra.mxu0 %v293_v8  ;;  %v129_v36 = vmax.f32 %v127_v11, %v128_v21  ;;  %v136_v37 = vmax.f32 %v134_v12, %v135_v22 }
  0x17   :  { %748 = vmatprep.subr.mxu0 %v893_v1 }
  0x18   :  { %16 = vsyncpa [#allocation4], 0  ;;  %749 = vmatpush3.msra.mxu0 %v292_v18  ;;  %v83_v38 = vmax.f32 %v81_v14, %v82_v26  ;;  %v142_v39 = vrot.slane %v141_v27, 1  ;;  %v149_v40 = vrot.slane %v148_v28, 1  ;;  %v164_v41 = vld [vmem:[%s1341_s2 + $0x20] sm:$0xff]  ;;  %v165_v42 = vld [vmem:[%s1341_s2 + $0x28] sm:$0xff]  ;;  %v168_v43 = vmax.f32 %v160_v23, %v161_v24  ;;  %781 = vmatprep.subr.mxu1 %v893_v1 }
  0x19   :  { %v416_v44 = vld [vmem:[%s1346_s7 + $0x50] sm:$0xff]  ;;  %750 = vmatprep.subr.mxu0 %v893_v1  ;;  %v92_v45 = vmax.f32 %v90_v19, %v91_v34  ;;  %v100_v46 = vrot.slane %v99_v35, 1  ;;  %v155_v47 = vsel %vm106_vm2, %v136_v37, %v129_v36  ;;  %v167_v49 = vld [vmem:[%s1341_s2 + $0x38] sm:$0xff]  ;;  %v175_v50 = vmax.f32 %v162_v29, %v163_v30  ;;  %v205_v51 = vld [vmem:[%s1342_s3] sm:$0xff]  ;;  %782 = vmatpush3.msra.mxu1 %v417_v31  ;;  %s896_s12 = smov [#allocation3]  }
  0x1a   :  { %v166_v48 = vld [vmem:[%s1341_s2 + $0x30] sm:$0xff]  ;;  %751 = vmatpush3.msra.mxu0 %v291_v32  ;;  %v107_v52 = vsel %vm106_vm2, %v83_v38, %v74_v25  ;;  %v143_v53 = vmax.f32 %v141_v27, %v142_v39  ;;  %v150_v54 = vmax.f32 %v148_v28, %v149_v40  ;;  %v169_v55 = vrot.slane %v168_v43, 4  ;;  %783 = vmatprep.subr.mxu1 %v893_v1  ;;  %v415_v56 = vld [vmem:[%s1346_s7 + $0x48] sm:$0xff]  ;;  %v414_v6 = vld [vmem:[%s1346_s7 + $0x40] sm:$0xff]  ;;  %s656_s13 = sshll.u32 %s896_s12, 4  ;;  %s657_s13 = int_to_ptr.vmem [resolvable:$true] %s656_s13 }
  0x1b   :  { %752 = vmatprep.subr.mxu0 %v893_v1  ;;  %v289_v57 = vld [vmem:[%s1344_s5 + $0x8] sm:$0xff]  ;;  %v101_v59 = vmax.f32 %v99_v35, %v100_v46  ;;  %v109_v60 = vsel %vm108_vm3, %v92_v45, %v107_v52  ;;  %v176_v61 = vrot.slane %v175_v50, 4  ;;  %v182_v62 = vmax.f32 %v164_v41, %v165_v42  ;;  %784 = vmatpush3.msra.mxu1 %v416_v44  ;;  %v207_v4 = vld [vmem:[%s1342_s3 + $0x10] sm:$0xff]  ;;  %v288_v7 = vld [vmem:[%s1344_s5] sm:$0xff]  ;;  %s871_s14 = scalar_lea.vmem %s657_s13, 64  ;;  %p876_p1 = scmp.lt.s32.totalorder %s657_s13, %s657_s13 }
  0x1c   :  { %v49_v58 = vld [vmem:[#allocation2 + $0x8] sm:$0xf]  ;;  %753 = vmatpush3.msra.mxu0 %v290_v33  ;;  %v156_v63 = vsel %vm108_vm3, %v143_v53, %v155_v47  ;;  %v170_v0 = vmax.f32 %v168_v43, %v169_v55  ;;  %v189_v2 = vmax.f32 %v166_v48, %v167_v49  ;;  %v209_v5 = vrot.slane %v205_v51, 4  ;;  %785 = vmatprep.subr.mxu1 %v893_v1  ;;  %v208_v12 = vld [vmem:[%s1342_s3 + $0x18] sm:$0xff]  ;;  %v412_v26 = vld [vmem:[%s1346_s7 + $0x30] sm:$0xff]  ;;  %p872_p0 = scmp.ne.s32.totalorder %s657_s13, %s871_s14  ;;  %p877_p2 = scmp.lt.s32.totalorder %s871_s14, %s871_s14 }
  0x1d   :  { %v206_v3 = vld [vmem:[%s1342_s3 + $0x8] sm:$0xff]  ;;  %754 = vmatprep.subr.mxu0 %v893_v1  ;;  %v111_v8 = vsel %vm110_vm4, %v101_v59, %v109_v60  ;;  %v157_v9 = vsel %vm110_vm4, %v150_v54, %v156_v63  ;;  %v177_v10 = vmax.f32 %v175_v50, %v176_v61  ;;  %v183_v11 = vrot.slane %v182_v62, 4  ;;  %786 = vmatpush3.msra.mxu1 %v415_v56  ;;  %v413_v17 = vld [vmem:[%s1346_s7 + $0x38] sm:$0xff]  ;;  %v242_v40 = vld [vmem:[%s1343_s4] sm:$0xf] }
  0x1e   :  { %755 = vmatpush3.msra.mxu0 %v289_v57  ;;  %v113_v13 = vmax.f32 %v49_v58, %v111_v8  ;;  %159 = vst [vmem:[#allocation2] sm:$0xf] %v157_v9  ;;  %v171_v14 = vrot.slane %v170_v0, 2  ;;  %v190_v15 = vrot.slane %v189_v2, 4  ;;  %v210_v16 = vmax.f32 %v205_v51, %v209_v5  ;;  %787 = vmatprep.subr.mxu1 %v893_v1  ;;  %v411_v35 = vld [vmem:[%s1346_s7 + $0x28] sm:$0xff]  ;;  %v410_v45 = vld [vmem:[%s1346_s7 + $0x20] sm:$0xff]  ;;  %p878_p3 = por %p877_p2, %p876_p1 }
  0x1f   :  { %756 = vmatprep.subr.mxu0 %v893_v1  ;;  %v178_v18 = vrot.slane %v177_v10, 2  ;;  %v184_v19 = vmax.f32 %v182_v62, %v183_v11  ;;  %v215_v20 = vrot.slane %v206_v3, 4  ;;  %v221_v21 = vrot.slane %v207_v4, 4  ;;  %788 = vmatpush3.msra.mxu1 %v414_v6  ;;  %v243_v50 = vld [vmem:[%s1343_s4 + $0x4] sm:$0xf]  ;;  %v409_v55 = vld [vmem:[%s1346_s7 + $0x18] sm:$0xff] }
  0x20   :  { %757 = vmatpush3.msra.mxu0 %v288_v7  ;;  %114 = vst [vmem:[#allocation2 + $0x8] sm:$0xf] %v113_v13  ;;  %v172_v22 = vmax.f32 %v170_v0, %v171_v14  ;;  %v191_v23 = vmax.f32 %v189_v2, %v190_v15  ;;  %v211_v24 = vrot.slane %v210_v16, 2  ;;  %v227_v25 = vrot.slane %v208_v12, 4  ;;  %789 = vmatprep.subr.mxu1 %v893_v1  ;;  %v244_v61 = vld [vmem:[%s1343_s4 + $0x8] sm:$0xf]  ;;  %p879_p4 = pnand %p878_p3, %p872_p0 }
  0x21   :  { %v179_v27 = vmax.f32 %v177_v10, %v178_v18  ;;  %v185_v28 = vrot.slane %v184_v19, 2  ;;  %v216_v29 = vmax.f32 %v206_v3, %v215_v20  ;;  %v222_v30 = vmax.f32 %v207_v4, %v221_v21  ;;  %790 = vmatpush3.msra.mxu1 %v413_v17  ;;  %820 = vmatprep.subr.mxu0 %v893_v1  ;;  %v245_v0 = vld [vmem:[%s1343_s4 + $0xc] sm:$0xf] }
  0x22   :  { %v173_v31 = vrot.slane %v172_v22, 1  ;;  %v192_v32 = vrot.slane %v191_v23, 2  ;;  %v212_v33 = vmax.f32 %v210_v16, %v211_v24  ;;  %v228_v34 = vmax.f32 %v208_v12, %v227_v25  ;;  %791 = vmatprep.subr.mxu1 %v893_v1 }
  0x23   :  { %v180_v36 = vrot.slane %v179_v27, 1  ;;  %v186_v37 = vmax.f32 %v184_v19, %v185_v28  ;;  %v217_v38 = vrot.slane %v216_v29, 2  ;;  %v223_v39 = vrot.slane %v222_v30, 2  ;;  %792 = vmatpush3.msra.mxu1 %v412_v26 }
  0x24   :  { %v174_v41 = vmax.f32 %v172_v22, %v173_v31  ;;  %v193_v42 = vmax.f32 %v191_v23, %v192_v32  ;;  %v213_v43 = vrot.slane %v212_v33, 1  ;;  %v229_v44 = vrot.slane %v228_v34, 2  ;;  %793 = vmatprep.subr.mxu1 %v893_v1 }
  0x25   :  { %v181_v46 = vmax.f32 %v179_v27, %v180_v36  ;;  %v187_v47 = vrot.slane %v186_v37, 1  ;;  %v218_v48 = vmax.f32 %v216_v29, %v217_v38  ;;  %v224_v49 = vmax.f32 %v222_v30, %v223_v39  ;;  %794 = vmatpush3.msra.mxu1 %v411_v35  ;;  %v1209_v4 = vld [vmem:[#allocation2] sm:$0xff] }
  0x26   :  { %v194_v51 = vrot.slane %v193_v42, 1  ;;  %v214_v52 = vmax.f32 %v212_v33, %v213_v43  ;;  %v230_v53 = vmax.f32 %v228_v34, %v229_v44  ;;  %v246_v54 = vsel %vm122_vm1, %v242_v40, -inf  ;;  %795 = vmatprep.subr.mxu1 %v893_v1  ;;  %v408_v44 = vld [vmem:[%s1346_s7 + $0x10] sm:$0xff] }
  0x27   :  { %v1195_v56 = vld [vmem:[#allocation2 + $0x8] sm:$0xff]  ;;  %v188_v57 = vmax.f32 %v186_v37, %v187_v47  ;;  %v200_v58 = vsel %vm106_vm2, %v181_v46, %v174_v41  ;;  %v219_v59 = vrot.slane %v218_v48, 1  ;;  %v225_v60 = vrot.slane %v224_v49, 1  ;;  %796 = vmatpush3.msra.mxu1 %v410_v45  ;;  %v406_v46 = vld [vmem:[%s1346_s7] sm:$0xff] }
  0x28   :  { %759 = vmatmul.mubr.f32.vlgmr.msra.gmra.mxu0 %v1195_v56  ;;  %v195_v62 = vmax.f32 %v193_v42, %v194_v51  ;;  %v231_v63 = vrot.slane %v230_v53, 1  ;;  %v247_v2 = vrot.slane %v246_v54, 4  ;;  %v253_v3 = vsel %vm122_vm1, %v243_v50, -inf  ;;  %797 = vmatprep.subr.mxu1 %v893_v1  ;;  %v407_v45 = vld [vmem:[%s1346_s7 + $0x8] sm:$0xff]  ;;  %v664_v47 = vld [vmem:[%s1345_s6] ss:$0 sm:$0xff] }
  0x29   :  { %761 = vmatprep.mubr.msk.f32.mxu0 %vm894_vm0, %v893_v1  ;;  %v201_v5 = vsel %vm108_vm3, %v188_v57, %v200_v58  ;;  %v220_v6 = vmax.f32 %v218_v48, %v219_v59  ;;  %v226_v7 = vmax.f32 %v224_v49, %v225_v60  ;;  %v254_v8 = vrot.slane %v253_v3, 4  ;;  %798 = vmatpush3.msra.mxu1 %v409_v55 }
  0x2a   :  { %v202_v9 = vsel %vm110_vm4, %v195_v62, %v201_v5  ;;  %v232_v10 = vmax.f32 %v230_v53, %v231_v63  ;;  %v248_v11 = vmax.f32 %v246_v54, %v247_v2  ;;  %v260_v12 = vsel %vm122_vm1, %v244_v61, -inf  ;;  %799 = vmatprep.subr.mxu1 %v893_v1 }
  0x2b   :  { %204 = vst [vmem:[#allocation2 + $0x20] sm:$0xf] %v202_v9  ;;  %v237_v13 = vsel %vm106_vm2, %v220_v6, %v214_v52  ;;  %v255_v14 = vmax.f32 %v253_v3, %v254_v8  ;;  %v261_v15 = vrot.slane %v260_v12, 4  ;;  %v267_v16 = vsel %vm122_vm1, %v245_v0, -inf  ;;  %800 = vmatpush3.msra.mxu1 %v408_v44  ;;  %v569_v8 = vld [vmem:[%s1348_s9 + $0x70] sm:$0xff]  ;;  %v568_v9 = vld [vmem:[%s1348_s9 + $0x68] sm:$0xff] }
  0x2c   :  { %762 = vmatmul.mubr.f32.gmra.mxu0 %v1209_v4  ;;  %v238_v17 = vsel %vm108_vm3, %v226_v7, %v237_v13  ;;  %v249_v18 = vrot.slane %v248_v11, 2  ;;  %v268_v19 = vrot.slane %v267_v16, 4  ;;  %801 = vmatprep.subr.mxu1 %v893_v1  ;;  %v570_v7 = vld [vmem:[%s1348_s9 + $0x78] sm:$0xff]  ;;  %v564_v13 = vld [vmem:[%s1348_s9 + $0x48] sm:$0xff]  ;;  %vm648_vm5 = vcmask 60416  }
  0x2d   :  { %764 = vmatprep.mubr.msk.f32.mxu0 %vm894_vm0, %v893_v1  ;;  %v239_v20 = vsel %vm110_vm4, %v232_v10, %v238_v17  ;;  %v256_v21 = vrot.slane %v255_v14, 2  ;;  %v262_v22 = vmax.f32 %v260_v12, %v261_v15  ;;  %802 = vmatpush3.msra.mxu1 %v407_v45  ;;  %v567_v10 = vld [vmem:[%s1348_s9 + $0x60] sm:$0xff]  ;;  %v565_v12 = vld [vmem:[%s1348_s9 + $0x50] sm:$0xff]  ;;  %v562_v15 = vld [vmem:[%s1348_s9 + $0x38] sm:$0xff] }
  0x2e   :  { %241 = vst [vmem:[#allocation2 + $0x10] sm:$0xf] %v239_v20  ;;  %v250_v23 = vmax.f32 %v248_v11, %v249_v18  ;;  %v269_v24 = vmax.f32 %v267_v16, %v268_v19  ;;  %803 = vmatprep.subr.mxu1 %v893_v1  ;;  %821 = vmatpush3.msra.mxu0 %v570_v7  ;;  %v566_v11 = vld [vmem:[%s1348_s9 + $0x58] sm:$0xff]  ;;  %v561_v16 = vld [vmem:[%s1348_s9 + $0x30] sm:$0xff]  ;;  %v560_v17 = vld [vmem:[%s1348_s9 + $0x28] sm:$0xff] }
  0x2f   :  { %v257_v25 = vmax.f32 %v255_v14, %v256_v21  ;;  %v263_v26 = vrot.slane %v262_v22, 2  ;;  %804 = vmatpush3.msra.mxu1 %v406_v46  ;;  %822 = vmatprep.subr.mxu0 %v893_v1  ;;  %v563_v14 = vld [vmem:[%s1348_s9 + $0x40] sm:$0xff]  ;;  %v558_v19 = vld [vmem:[%s1348_s9 + $0x18] sm:$0xff]  ;;  %v557_v20 = vld [vmem:[%s1348_s9 + $0x10] sm:$0xff] }
  0x30   :  { %v251_v27 = vrot.slane %v250_v23, 1  ;;  %v270_v28 = vrot.slane %v269_v24, 2  ;;  %823 = vmatpush3.msra.mxu0 %v569_v8  ;;  %v559_v18 = vld [vmem:[%s1348_s9 + $0x20] sm:$0xff]  ;;  %v556_v21 = vld [vmem:[%s1348_s9 + $0x8] sm:$0xff] }
  0x31   :  { %v258_v29 = vrot.slane %v257_v25, 1  ;;  %v264_v30 = vmax.f32 %v262_v22, %v263_v26  ;;  %824 = vmatprep.subr.mxu0 %v893_v1  ;;  %v555_v22 = vld [vmem:[%s1348_s9] sm:$0xff] }
  0x32   :  { %v1222_v31 = vld [vmem:[#allocation2 + $0x20] sm:$0xff]  ;;  %v252_v32 = vmax.f32 %v250_v23, %v251_v27  ;;  %v271_v33 = vmax.f32 %v269_v24, %v270_v28  ;;  %825 = vmatpush3.msra.mxu0 %v568_v9 }
  0x33   :  { %765 = vmatmul.mubr.f32.gmra.mxu0 %v1222_v31  ;;  %v259_v34 = vmax.f32 %v257_v25, %v258_v29  ;;  %v265_v35 = vrot.slane %v264_v30, 1  ;;  %826 = vmatprep.subr.mxu0 %v893_v1 }
  0x34   :  { %767 = vmatprep.mubr.msk.f32.mxu0 %vm894_vm0, %v893_v1  ;;  %v272_v36 = vrot.slane %v271_v33, 1  ;;  %827 = vmatpush3.msra.mxu0 %v567_v10 }
  0x35   :  { %v1227_v37 = vld [vmem:[#allocation2 + $0x10] sm:$0xff]  ;;  %v266_v38 = vmax.f32 %v264_v30, %v265_v35  ;;  %v278_v39 = vsel %vm106_vm2, %v259_v34, %v252_v32  ;;  %828 = vmatprep.subr.mxu0 %v893_v1  ;;  %v665_v30 = vld [vmem:[%s1347_s8] ss:$0 sm:$0xff] }
  0x36   :  { %v273_v40 = vmax.f32 %v271_v33, %v272_v36  ;;  %829 = vmatpush3.msra.mxu0 %v566_v11 }
  0x37   :  { %768 = vmatmul.mubr.f32.gmra.mxu0 %v1227_v37  ;;  %v279_v41 = vsel %vm108_vm3, %v266_v38, %v278_v39  ;;  %830 = vmatprep.subr.mxu0 %v893_v1 }
  0x38   :  { %770 = vmatprep.mubr.msk.f32.mxu0 %vm894_vm0, %v893_v1  ;;  %v280_v42 = vsel %vm110_vm4, %v273_v40, %v279_v41  ;;  %831 = vmatpush3.msra.mxu0 %v565_v12 }
  0x39   :  { %282 = vst [vmem:[#allocation2 + $0x18] sm:$0xf] %v280_v42  ;;  %832 = vmatprep.subr.mxu0 %v893_v1 }
  0x3a   :  { %833 = vmatpush3.msra.mxu0 %v564_v13 }
  0x3b   :  { %834 = vmatprep.subr.mxu0 %v893_v1 }
  0x3c   :  { %835 = vmatpush3.msra.mxu0 %v563_v14 }
  0x3d   :  { %836 = vmatprep.subr.mxu0 %v893_v1 }
  0x3e   :  { %837 = vmatpush3.msra.mxu0 %v562_v15 }
  0x3f   :  { %838 = vmatprep.subr.mxu0 %v893_v1 }
  0x40   :  { %v1235_v43 = vld [vmem:[#allocation2 + $0x18] sm:$0xff]  ;;  %839 = vmatpush3.msra.mxu0 %v561_v16 }
  0x41   :  { %771 = vmatmul.mubr.f32.gmra.mxu0 %v1235_v43  ;;  %840 = vmatprep.subr.mxu0 %v893_v1 }
  0x42   :  { %852 = vmatprep.mubr.msk.f32.mxu0 %vm894_vm0, %v893_v1  ;;  %841 = vmatpush3.msra.mxu0 %v560_v17 }
  0x43   :  { %842 = vmatprep.subr.mxu0 %v893_v1 }
  0x44   :  { %843 = vmatpush3.msra.mxu0 %v559_v18 }
  0x45   :  { %844 = vmatprep.subr.mxu0 %v893_v1 }
  0x46   :  { %845 = vmatpush3.msra.mxu0 %v558_v19 }
  0x47   :  { %846 = vmatprep.subr.mxu0 %v893_v1 }
  0x48   :  { %847 = vmatpush3.msra.mxu0 %v557_v20 }
  0x49   :  { %848 = vmatprep.subr.mxu0 %v893_v1 }
  0x4a   :  { %849 = vmatpush3.msra.mxu0 %v556_v21 }
  0x4b   :  { %850 = vmatprep.subr.mxu0 %v893_v1 }
  0x4c   :  { %851 = vmatpush3.msra.mxu0 %v555_v22 }
  0xe8   :  { %v377_v48 = vpop.f32.mrf.mxu0 }
  0xe9   :  { %v378_v49 = vadd.f32 %v664_v47, %v377_v48 }
  0xea   :  { %v760_v50 = vpop.f32.mrf.mxu0 }
  0xeb   :  { %v401_v51 = vmax.f32 %v378_v49, 0.0 }
  0xec   :  { %v382_v52 = vpop.f32.mrf.mxu0 }
  0xed   :  { %v383_v53 = vadd.f32 %v664_v47, %v382_v52  ;;  %806 = vmatmul.mubr.f32.vlgmr.msra.gmra.mxu1 %v401_v51 }
  0xee   :  { %v763_v54 = vpop.f32.mrf.mxu0  ;;  %808 = vmatprep.mubr.msk.f32.mxu1 %vm894_vm0, %v893_v1 }
  0xef   :  { %v402_v55 = vmax.f32 %v383_v53, 0.0 }
  0xf1   :  { %809 = vmatmul.mubr.f32.gmra.mxu1 %v402_v55 }
  0xf2   :  { %811 = vmatprep.mubr.msk.f32.mxu1 %vm894_vm0, %v893_v1 }
  0xf3   :  { %v387_v57 = vpop.f32.mrf.mxu0 }
  0xf4   :  { %v388_v58 = vadd.f32 %v664_v47, %v387_v57 }
  0xf5   :  { %v766_v59 = vpop.f32.mrf.mxu0 }
  0xf6   :  { %v403_v60 = vmax.f32 %v388_v58, 0.0 }
  0xf7   :  { %v392_v61 = vpop.f32.mrf.mxu0 }
  0xf8   :  { %v393_v62 = vadd.f32 %v664_v47, %v392_v61  ;;  %812 = vmatmul.mubr.f32.gmra.mxu1 %v403_v60 }
  0xf9   :  { %v769_v63 = vpop.f32.mrf.mxu0  ;;  %814 = vmatprep.mubr.msk.f32.mxu1 %vm894_vm0, %v893_v1 }
  0xfa   :  { %v404_v0 = vmax.f32 %v393_v62, 0.0 }
  0xfc   :  { %815 = vmatmul.mubr.f32.gmra.mxu1 %v404_v0 }
  0xfd   :  { %817 = vmatprep.mubr.msk.f32.mxu1 %vm894_vm0, %v893_v1 }
 0x101   :  { %v397_v2 = vpop.f32.mrf.mxu0 }
 0x102   :  { %v398_v3 = vadd.f32 %v664_v47, %v397_v2 }
 0x103   :  { %v772_v5 = vpop.f32.mrf.mxu0 }
 0x104   :  { %v405_v6 = vmax.f32 %v398_v3, 0.0 }
 0x106   :  { %818 = vmatmul.mubr.f32.gmra.mxu1 %v405_v6 }
 0x1ad   :  { %v495_v23 = vpop.f32.mrf.mxu1 }
 0x1ae   :  { %v496_v34 = vadd.f32 %v665_v30, %v495_v23 }
 0x1af   :  { %v807_v24 = vpop.f32.mrf.mxu1 }
 0x1b1   :  { %v500_v25 = vpop.f32.mrf.mxu1 }
 0x1b2   :  { %v501_v33 = vadd.f32 %v665_v30, %v500_v25 }
 0x1b3   :  { %v810_v26 = vpop.f32.mrf.mxu1 }
 0x1b4   :  { %v519_v36 = vmax.f32 %v496_v34, %v501_v33 }
 0x1b8   :  { %v505_v27 = vpop.f32.mrf.mxu1 }
 0x1b9   :  { %v506_v35 = vadd.f32 %v665_v30, %v505_v27 }
 0x1ba   :  { %v813_v28 = vpop.f32.mrf.mxu1 }
 0x1bb   :  { %v520_v39 = vmax.f32 %v519_v36, %v506_v35 }
 0x1bc   :  { %v510_v29 = vpop.f32.mrf.mxu1 }
 0x1bd   :  { %v511_v38 = vadd.f32 %v665_v30, %v510_v29 }
 0x1be   :  { %v816_v32 = vpop.f32.mrf.mxu1 }
 0x1bf   :  { %v521_v40 = vmax.f32 %v520_v39, %v511_v38 }
 0x1c6   :  { %v515_v1 = vpop.f32.mrf.mxu1 }
 0x1c7   :  { %v516_v41 = vadd.f32 %v665_v30, %v515_v1 }
 0x1c8   :  { %v819_v42 = vpop.f32.mrf.mxu1 }
 0x1c9   :  { %v522_v44 = vmax.f32 %v521_v40, %v516_v41 }
 0x1cb   :  { %v523_v45 = vsub.f32 %v496_v34, %v522_v44  ;;  %v529_v46 = vsub.f32 %v501_v33, %v522_v44  ;;  %v535_v47 = vsub.f32 %v506_v35, %v522_v44  ;;  %v541_v48 = vsub.f32 %v511_v38, %v522_v44 }
 0x1cc   :  { %v547_v52 = vsub.f32 %v516_v41, %v522_v44 }
 0x1cd   :  { %v524_v49 = vmul.f32 1.442695, %v523_v45  ;;  %v530_v50 = vmul.f32 1.442695, %v529_v46  ;;  %v536_v51 = vmul.f32 1.442695, %v535_v47 }
 0x1ce   :  { %v542_v53 = vmul.f32 1.442695, %v541_v48  ;;  %v548_v54 = vmul.f32 1.442695, %v547_v52 }
 0x1cf   :  { %859 = vpow2.f32 %v524_v49 }
 0x1d0   :  { %861 = vpow2.f32 %v530_v50 }
 0x1d1   :  { %863 = vpow2.f32 %v536_v51 }
 0x1d2   :  { %865 = vpow2.f32 %v542_v53 }
 0x1d3   :  { %867 = vpow2.f32 %v548_v54 }
 0x1dc   :  { %v860_v55 = vpop.eup %859 }
 0x1dd   :  { %v862_v57 = vpop.eup %861  ;;  %v527_v63 = vmul.f32 %v860_v55, %v1195_v56  ;;  %v666_v56 = vld [vmem:[%s1349_s10] ss:$0 sm:$0xff] }
 0x1de   :  { %v532_v58 = vadd.f32 %v862_v57, %v860_v55  ;;  %v864_v59 = vpop.eup %863  ;;  %v533_v0 = vmul.f32 %v862_v57, %v1209_v4 }
 0x1df   :  { %v866_v61 = vpop.eup %865  ;;  %v539_v6 = vmul.f32 %v864_v59, %v1222_v31 }
 0x1e0   :  { %v538_v60 = vadd.f32 %v864_v59, %v532_v58  ;;  %v868_v2 = vpop.eup %867  ;;  %v534_v5 = vadd.f32 %v533_v0, %v527_v63  ;;  %v545_v8 = vmul.f32 %v866_v61, %v1227_v37 }
 0x1e1   :  { %v551_v10 = vmul.f32 %v868_v2, %v1235_v43 }
 0x1e2   :  { %v544_v62 = vadd.f32 %v866_v61, %v538_v60  ;;  %v540_v7 = vadd.f32 %v539_v6, %v534_v5 }
 0x1e4   :  { %v550_v3 = vadd.f32 %v868_v2, %v544_v62  ;;  %v546_v9 = vadd.f32 %v545_v8, %v540_v7 }
 0x1e6   :  { %869 = vrcp.f32 %v550_v3  ;;  %v552_v11 = vadd.f32 %v551_v10, %v546_v9 }
 0x1f3   :  { %v870_v12 = vpop.eup %869 }
 0x1f4   :  { %v554_v13 = vmul.f32 %v870_v12, %v552_v11 }
 0x1f6   :  { %853 = vmatmul.mubr.f32.vlgmr.msra.gmra.mxu0 %v554_v13 }
 0x2b6   :  { %v644_v4 = vpop.f32.mrf.mxu0 }
 0x2b7   :  { %v645_v14 = vadd.f32 %v666_v56, %v644_v4 }
 0x2b8   :  { %v854_v31 = vpop.f32.mrf.mxu0 }
 0x2b9   :  { %649 = vst.msk [vmem:[#allocation3] sm:$0xf] %vm648_vm5, %v645_v14 }
 0x2ba   :  { %882 = shalt.err (!%p879_p4)
}
 0x2bb   :  { %659 = dma.vmem_to_hbm [thread:$0]  %s657_s13, 64, %s1350_s11, [#allocation4]  }
 0x2bc   :  { %891 = dma.done.wait [#allocation4], 64  }
 0x2bd   :  { %892 = vsyncadd [#allocation4], 4294967232 }
 0x2be   :  { %663 = vsyncpa [#allocation4], 1 }

</bundles_post_ra>
